<compile_context>
chip_gen: v5e
topology: v5e:2x2
jax: 0.10.0
libtpu: 0.0.40
codegen_flags: <defaults>
</compile_context>

<pallas_src>
import functools

import jax
import jax.numpy as jnp
from jax.experimental import pallas as pl
from jax.experimental.pallas import tpu as pltpu

BN_EPS = 1e-5
LANE = 128
MAX_TILE_N = 4096  # keeps the kernel inside v5e's 16 MiB scoped-VMEM default


def _mlp_kernel(x_ref, w1_ref, b1_ref, w23_ref, b23_ref, o_ref, *,
                compute_dtype):
    """x @ w1' + b1' -> ReLU -> @ w23 + b23  (BN already folded into w1'/b1')."""
    x = x_ref[...].astype(compute_dtype)

    # linear1 (with BatchNorm folded in) + ReLU; f32 accumulation & bias add.
    h1 = jnp.dot(x, w1_ref[...].astype(compute_dtype),
                 preferred_element_type=jnp.float32) + b1_ref[...]
    h1 = jnp.maximum(h1, 0.0)

    # Fused (linear2 -> output):  y = h1 @ (w2 @ w3) + (b2 @ w3 + b3).
    y = jnp.dot(h1.astype(compute_dtype), w23_ref[...].astype(compute_dtype),
                preferred_element_type=jnp.float32) + b23_ref[...]

    o_ref[...] = y.astype(o_ref.dtype)


def mlp_forward(x, w1, b1, w2, b2, w3, b3, *, tile_n=2048,
                compute_dtype=jnp.float32):
    """Forward pass. Weights are stored transposed ([in, out]) for x @ W + b."""
    n, d_in = x.shape
    hidden = w1.shape[1]
    out_dim = w3.shape[1]
    hi = jax.lax.Precision.HIGHEST

    # ---- BatchNorm1d(affine=False), training mode, computed in the wrapper.
    # Two-pass (mean then E[(x-mean)^2]) formulation avoids the E[x^2]-E[x]^2
    # cancellation flagged in review; XLA fuses this (N, d_in) reduction.
    xf = x.astype(jnp.float32)
    mean = jnp.mean(xf, axis=0, keepdims=True)                      # (1, d_in)
    var = jnp.mean(jnp.square(xf - mean), axis=0, keepdims=True)    # biased
    inv_std = jax.lax.rsqrt(var + BN_EPS)

    # ---- Fold BN into linear1 (trace-time, f32): 4x256 of work.
    w1f = inv_std.reshape(d_in, 1) * w1                             # (d_in, hidden)
    b1f = b1 - jnp.dot(mean * inv_std, w1, precision=hi)            # (1, hidden)

    # ---- Algebraic fusion of linear2 + output layer (f32 HIGHEST).
    w23 = jnp.dot(w2, w3, precision=hi)                             # (hidden, out)
    b23 = jnp.dot(b2, w3, precision=hi) + b3                        # (1, out)

    # ---- Pad output features to a full 128-lane vreg -> unmasked stores.
    # TODO(synk): for very large N, emit compact (tile_n, out_dim) or
    # lane-dense transposed (out_pad, tile_n) output blocks instead, to avoid
    # the 64x padded HBM writeback.
    out_pad = pl.cdiv(out_dim, LANE) * LANE
    if out_pad != out_dim:
        w23 = jnp.pad(w23, ((0, 0), (0, out_pad - out_dim)))
        b23 = jnp.pad(b23, ((0, 0), (0, out_pad - out_dim)))

    # ---- Batch tiling: biggest tile that fits (padded rows are sliced off;
    # stats above used the true, unpadded batch so padding is inert).
    n8 = pl.cdiv(n, 8) * 8
    tile_n = pl.cdiv(min(tile_n, MAX_TILE_N, n8), 8) * 8
    n_pad = pl.cdiv(n8, tile_n) * tile_n
    xp = jnp.pad(x, ((0, n_pad - n), (0, 0))) if n_pad != n else x
    grid_n = n_pad // tile_n

    kernel = functools.partial(_mlp_kernel, compute_dtype=compute_dtype)
    full = lambda shape: pl.BlockSpec(shape, lambda i: (0, 0))

    y_pad = pl.pallas_call(
        kernel,
        out_shape=jax.ShapeDtypeStruct((n_pad, out_pad), jnp.float32),
        grid=(grid_n,),
        in_specs=[
            pl.BlockSpec((tile_n, d_in), lambda i: (i, 0)),   # x tile
            full((d_in, hidden)),                             # BN-folded w1
            full((1, hidden)),                                # BN-folded b1
            full((hidden, out_pad)),                          # fused w2 @ w3
            full((1, out_pad)),                               # fused bias
        ],
        out_specs=pl.BlockSpec((tile_n, out_pad), lambda i: (i, 0)),
        compiler_params=pltpu.CompilerParams(
            dimension_semantics=("parallel",)),
    )(xp, w1f, b1f, w23, b23)

    return y_pad[:n, :out_dim]


def init_params(key, input_dim=4, hidden_dim=256, output_dim=2):
    """Deterministic init mimicking torch.nn.Linear's uniform(-1/sqrt(fan_in), +)."""
    ks = jax.random.split(key, 6)

    def lin(kw, kb, fan_in, fan_out):
        bound = 1.0 / jnp.sqrt(fan_in)
        # Stored as [in, out] (transpose of torch's [out, in]) for x @ W.
        w = jax.random.uniform(kw, (fan_in, fan_out), jnp.float32, -bound, bound)
        b = jax.random.uniform(kb, (1, fan_out), jnp.float32, -bound, bound)
        return w, b

    w1, b1 = lin(ks[0], ks[1], input_dim, hidden_dim)
    w2, b2 = lin(ks[2], ks[3], hidden_dim, hidden_dim)
    w3, b3 = lin(ks[4], ks[5], hidden_dim, output_dim)
    return w1, b1, w2, b2, w3, b3


if __name__ == "__main__":
    key = jax.random.PRNGKey(0)
    k_x, k_p = jax.random.split(key)

    # batch=500 stays tiny (500 x 4 f32) but exercises the non-multiple-of-8
    # batch padding path; it runs in a single grid step (tile_n -> 504).
    batch, input_dim, hidden_dim, output_dim = 500, 4, 256, 2
    x = jax.random.normal(k_x, (batch, input_dim), dtype=jnp.float32)
    params = init_params(k_p, input_dim, hidden_dim, output_dim)

    fwd = jax.jit(mlp_forward)
    y = fwd(x, *params)
    jax.block_until_ready(y)

    # Pure-JAX reference of the original (unfused) module math.
    w1, b1, w2, b2, w3, b3 = params
    hi = jax.lax.Precision.HIGHEST
    mean = jnp.mean(x, axis=0, keepdims=True)
    var = jnp.mean((x - mean) ** 2, axis=0, keepdims=True)
    xn = (x - mean) / jnp.sqrt(var + BN_EPS)
    h1 = jnp.maximum(jnp.dot(xn, w1, precision=hi) + b1, 0.0)
    h2 = jnp.dot(h1, w2, precision=hi) + b2
    ref = jnp.dot(h2, w3, precision=hi) + b3

    assert y.shape == (batch, output_dim)
    err = float(jnp.max(jnp.abs(y - ref)))
    assert jnp.allclose(y, ref, atol=5e-4, rtol=5e-4), f"max abs err {err}"

    print("KERNEL_OK")
</pallas_src>

<mosaic_0001>
module attributes {stable_mosaic.version = 11 : i64} {
  func.func @_mlp_kernel(%arg0: i32, %arg1: memref<504x4xf32, #tpu.memory_space<vmem>>, %arg2: memref<4x256xf32, #tpu.memory_space<vmem>>, %arg3: memref<1x256xf32, #tpu.memory_space<vmem>>, %arg4: memref<256x128xf32, #tpu.memory_space<vmem>>, %arg5: memref<1x128xf32, #tpu.memory_space<vmem>>, %arg6: memref<504x128xf32, #tpu.memory_space<vmem>>) attributes {dimension_semantics = [#tpu.dimension_semantics<parallel>], iteration_bounds = array<i64: 1>, scalar_prefetch = 0 : i64, scratch_operands = 0 : i64, tpu.core_type = #tpu.core_type<tc>, window_params = [{transform_indices = @transform_0, window_bounds = array<i64: 504, 4>}, {pipeline_mode = #tpu.pipeline_mode<synchronous>, transform_indices = @transform_1, window_bounds = array<i64: 4, 256>}, {pipeline_mode = #tpu.pipeline_mode<synchronous>, transform_indices = @transform_2, window_bounds = array<i64: 1, 256>}, {pipeline_mode = #tpu.pipeline_mode<synchronous>, transform_indices = @transform_3, window_bounds = array<i64: 256, 128>}, {pipeline_mode = #tpu.pipeline_mode<synchronous>, transform_indices = @transform_4, window_bounds = array<i64: 1, 128>}, {transform_indices = @transform_5, window_bounds = array<i64: 504, 128>}]} {
    %c0 = arith.constant 0 : index
    %c0_0 = arith.constant 0 : index
    %0 = vector.load %arg1[%c0, %c0_0] : memref<504x4xf32, #tpu.memory_space<vmem>>, vector<504x4xf32>
    %c0_1 = arith.constant 0 : index
    %c0_2 = arith.constant 0 : index
    %1 = vector.load %arg2[%c0_1, %c0_2] : memref<4x256xf32, #tpu.memory_space<vmem>>, vector<4x256xf32>
    %cst = arith.constant dense<0.000000e+00> : vector<504x256xf32>
    %2 = tpu.matmul %0, %1, %cst {dimension_numbers = #tpu.dot_dimension_numbers<[1], [0], [0], [1], [0, 0, 1, 1], [], []>} : vector<504x4xf32>, vector<4x256xf32>, vector<504x256xf32> -> vector<504x256xf32>
    %c0_3 = arith.constant 0 : index
    %c0_4 = arith.constant 0 : index
    %3 = vector.load %arg3[%c0_3, %c0_4] : memref<1x256xf32, #tpu.memory_space<vmem>>, vector<1x256xf32>
    %4 = vector.broadcast %3 : vector<1x256xf32> to vector<504x256xf32>
    %5 = arith.addf %2, %4 : vector<504x256xf32>
    %cst_5 = arith.constant 0.000000e+00 : f32
    %6 = vector.broadcast %cst_5 : f32 to vector<504x256xf32>
    %7 = arith.maximumf %5, %6 : vector<504x256xf32>
    %c0_6 = arith.constant 0 : index
    %c0_7 = arith.constant 0 : index
    %8 = vector.load %arg4[%c0_6, %c0_7] : memref<256x128xf32, #tpu.memory_space<vmem>>, vector<256x128xf32>
    %cst_8 = arith.constant dense<0.000000e+00> : vector<504x128xf32>
    %9 = tpu.matmul %7, %8, %cst_8 {dimension_numbers = #tpu.dot_dimension_numbers<[1], [0], [0], [1], [0, 0, 1, 1], [], []>} : vector<504x256xf32>, vector<256x128xf32>, vector<504x128xf32> -> vector<504x128xf32>
    %c0_9 = arith.constant 0 : index
    %c0_10 = arith.constant 0 : index
    %10 = vector.load %arg5[%c0_9, %c0_10] : memref<1x128xf32, #tpu.memory_space<vmem>>, vector<1x128xf32>
    %11 = vector.broadcast %10 : vector<1x128xf32> to vector<504x128xf32>
    %12 = arith.addf %9, %11 : vector<504x128xf32>
    %c0_11 = arith.constant 0 : index
    %c0_12 = arith.constant 0 : index
    %13 = vector.load %arg6[%c0_11, %c0_12] : memref<504x128xf32, #tpu.memory_space<vmem>>, vector<504x128xf32>
    tpu.vector_store %arg6[%c0_11, %c0_12], %12 {strides = array<i32>} : memref<504x128xf32, #tpu.memory_space<vmem>>, vector<504x128xf32>,
    return
  }
  func.func @transform_0(%arg0: i32) -> (i32, i32) {
    %c0_i32 = arith.constant 0 : i32
    %c0_i32_0 = arith.constant 0 : i32
    return %arg0, %c0_i32 : i32, i32
  }
  func.func @transform_1(%arg0: i32) -> (i32, i32) {
    %c0_i32 = arith.constant 0 : i32
    %c0_i32_0 = arith.constant 0 : i32
    %c0_i32_1 = arith.constant 0 : i32
    return %c0_i32, %c0_i32_0 : i32, i32
  }
  func.func @transform_2(%arg0: i32) -> (i32, i32) {
    %c0_i32 = arith.constant 0 : i32
    %c0_i32_0 = arith.constant 0 : i32
    %c0_i32_1 = arith.constant 0 : i32
    return %c0_i32, %c0_i32_0 : i32, i32
  }
  func.func @transform_3(%arg0: i32) -> (i32, i32) {
    %c0_i32 = arith.constant 0 : i32
    %c0_i32_0 = arith.constant 0 : i32
    %c0_i32_1 = arith.constant 0 : i32
    return %c0_i32, %c0_i32_0 : i32, i32
  }
  func.func @transform_4(%arg0: i32) -> (i32, i32) {
    %c0_i32 = arith.constant 0 : i32
    %c0_i32_0 = arith.constant 0 : i32
    %c0_i32_1 = arith.constant 0 : i32
    return %c0_i32, %c0_i32_0 : i32, i32
  }
  func.func @transform_5(%arg0: i32) -> (i32, i32) {
    %c0_i32 = arith.constant 0 : i32
    %c0_i32_0 = arith.constant 0 : i32
    return %arg0, %c0_i32 : i32, i32
  }
}

</mosaic_0001>

<bundles_post_ra>
// kernel: sub.9
= control target key start
LH: loop header
LB: loop body
LE: loop exit
PB: predicated region body
PF: predicated region fallthrough
CT: control target
= control target key end

     0   :  { %s56_s0 = inlined_call_operand.vmem [shape: f32[1,256], index: 0, kind: input, shape index: {}]   ;;  %s57_s1 = inlined_call_operand.vmem [shape: f32[1,256], index: 1, kind: input, shape index: {}]   ;;  %s58_s2 = inlined_call_operand.vmem [shape: f32[1,256], index: 2, kind: output, shape index: {}]  }
   0x1   :  { %v3_v0 = vld [vmem:[%s56_s0] sm:$0x1]  ;;  %v20_v2 = vld [vmem:[%s56_s0 + $0x1] sm:$0x1] }
   0x2   :  { %v4_v1 = vld [vmem:[%s57_s1] sm:$0x1]  ;;  %v21_v4 = vld [vmem:[%s57_s1 + $0x1] sm:$0x1] }
   0x3   :  { %v7_v3 = vsub.f32 %v3_v0, %v4_v1  ;;  %v16_v5 = vsub.f32 %v20_v2, %v21_v4 }
   0x5   :  { %9 = vst [vmem:[%s58_s2] sm:$0x1] %v7_v3 }
   0x6   :  { %22 = vst [vmem:[%s58_s2 + $0x1] sm:$0x1] %v16_v5 }

// kernel: mlp_forward.1
= control target key start
LH: loop header
LB: loop body
LE: loop exit
PB: predicated region body
PF: predicated region fallthrough
CT: control target
= control target key end

     0   :  { %vm284_vm0 = vcmask 1043456   ;;  %vm94_vm1 = vcmask 31744   ;;  %s2349_s1 = inlined_call_operand.vmem [shape: f32[4,256], index: 1, kind: input, shape index: {}]   ;;  %s2350_s0 = inlined_call_operand.vmem [shape: f32[504,4], index: 0, kind: input, shape index: {}]   ;;  %s2351_s3 = inlined_call_operand.vmem [shape: f32[256,128], index: 3, kind: input, shape index: {}]   ;;  %s2352_s2 = inlined_call_operand.vmem [shape: f32[1,256], index: 2, kind: input, shape index: {}]   ;;  %s2353_s4 = inlined_call_operand.vmem [shape: f32[1,128], index: 4, kind: input, shape index: {}]   ;;  %s2354_s5 = inlined_call_operand.vmem [shape: f32[504,128], index: 5, kind: output, shape index: {}]  }
   0x1   :  { %v83_v0 = vld [vmem:[%s2349_s1] sm:$0xff]  ;;  %v21_v4 = vld [vmem:[%s2350_s0 + $0x8] sm:$0xff]  ;;  %v22_v5 = vld [vmem:[%s2350_s0 + $0x10] sm:$0xff] }
   0x2   :  { %91 = vst [vmem:[#allocation1] ss:$2 sm:$0xff] %v83_v0  ;;  %v20_v1 = vld [vmem:[%s2350_s0] sm:$0xff]  ;;  %v23_v6 = vld [vmem:[%s2350_s0 + $0x18] sm:$0xff]  ;;  %v25_v8 = vld [vmem:[%s2350_s0 + $0x28] sm:$0xff] }
   0x3   :  { %v24_v7 = vld [vmem:[%s2350_s0 + $0x20] sm:$0xff]  ;;  %v26_v9 = vld [vmem:[%s2350_s0 + $0x30] sm:$0xff]  ;;  %v27_v10 = vld [vmem:[%s2350_s0 + $0x38] sm:$0xff] }
   0x4   :  { %v28_v11 = vld [vmem:[%s2350_s0 + $0x40] sm:$0xff]  ;;  %v29_v12 = vld [vmem:[%s2350_s0 + $0x48] sm:$0xff]  ;;  %v842_v13 = vld [vmem:[%s2351_s3 + $0x78] sm:$0xff] }
   0x5   :  { %v841_v14 = vld [vmem:[%s2351_s3 + $0x70] sm:$0xff]  ;;  %v858_v15 = vld [vmem:[%s2351_s3 + $0xf8] sm:$0xff]  ;;  %1470 = vmatpush.msra.mxu2 %v842_v13  ;;  %v840_v17 = vld [vmem:[%s2351_s3 + $0x68] sm:$0xff] }
   0x6   :  { %1486 = vmatpush.msra.mxu3 %v858_v15  ;;  %v857_v16 = vld [vmem:[%s2351_s3 + $0xf0] sm:$0xff]  ;;  %v839_v19 = vld [vmem:[%s2351_s3 + $0x60] sm:$0xff]  ;;  %v856_v20 = vld [vmem:[%s2351_s3 + $0xe8] sm:$0xff] }
   0x7   :  { %1471 = vmatpush.msra.mxu2 %v841_v14  ;;  %v30_v18 = vld [vmem:[%s2350_s0 + $0x50] sm:$0xff]  ;;  %v838_v21 = vld [vmem:[%s2351_s3 + $0x58] sm:$0xff]  ;;  %v855_v22 = vld [vmem:[%s2351_s3 + $0xe0] sm:$0xff] }
   0x8   :  { %1487 = vmatpush.msra.mxu3 %v857_v16  ;;  %v837_v23 = vld [vmem:[%s2351_s3 + $0x50] sm:$0xff]  ;;  %v854_v24 = vld [vmem:[%s2351_s3 + $0xd8] sm:$0xff]  ;;  %v836_v25 = vld [vmem:[%s2351_s3 + $0x48] sm:$0xff] }
   0x9   :  { %v92_v2 = vld.sshfl [vmem:[#allocation1] sm:$0xff pattern:$0x75316420]  ;;  %v93_v3 = vld.sshfl [vmem:[#allocation1 + $0x8] sm:$0xff pattern:$0x75316420]  ;;  %1472 = vmatpush.msra.mxu2 %v840_v17 }
   0xa   :  { %1342 = vmatpush.msk.msra.mxu0 %vm284_vm0, %v92_v2  ;;  %1406 = vmatpush.msk.msra.mxu1 %vm284_vm0, %v93_v3  ;;  %v853_v26 = vld [vmem:[%s2351_s3 + $0xd0] sm:$0xff]  ;;  %v31_v27 = vld [vmem:[%s2350_s0 + $0x58] sm:$0xff]  ;;  %v835_v28 = vld [vmem:[%s2351_s3 + $0x40] sm:$0xff] }
   0xb   :  { %1343 = vmatmul.msk.f32.vlgmr.msra.gmra.mxu0 %vm94_vm1, %v20_v1  ;;  %1407 = vmatmul.msk.f32.vlgmr.msra.gmra.mxu1 %vm94_vm1, %v20_v1  ;;  %v852_v29 = vld [vmem:[%s2351_s3 + $0xc8] sm:$0xff]  ;;  %v834_v30 = vld [vmem:[%s2351_s3 + $0x38] sm:$0xff]  ;;  %v851_v31 = vld [vmem:[%s2351_s3 + $0xc0] sm:$0xff] }
   0xc   :  { %863 = vmatpush.msrb.mxu0 %v842_v13  ;;  %1069 = vmatpush.msrb.mxu1 %v858_v15  ;;  %v833_v32 = vld [vmem:[%s2351_s3 + $0x30] sm:$0xff]  ;;  %v850_v33 = vld [vmem:[%s2351_s3 + $0xb8] sm:$0xff]  ;;  %v32_v34 = vld [vmem:[%s2350_s0 + $0x60] sm:$0xff] }
   0xd   :  { %1473 = vmatpush.msra.mxu2 %v839_v19  ;;  %1488 = vmatpush.msra.mxu3 %v856_v20  ;;  %v832_v35 = vld [vmem:[%s2351_s3 + $0x28] sm:$0xff]  ;;  %v849_v36 = vld [vmem:[%s2351_s3 + $0xb0] sm:$0xff]  ;;  %v831_v37 = vld [vmem:[%s2351_s3 + $0x20] sm:$0xff] }
   0xe   :  { %864 = vmatpush.msrb.mxu0 %v841_v14  ;;  %1070 = vmatpush.msrb.mxu1 %v857_v16  ;;  %v848_v38 = vld [vmem:[%s2351_s3 + $0xa8] sm:$0xff]  ;;  %v830_v39 = vld [vmem:[%s2351_s3 + $0x18] sm:$0xff]  ;;  %v847_v40 = vld [vmem:[%s2351_s3 + $0xa0] sm:$0xff] }
   0xf   :  { %1474 = vmatpush.msra.mxu2 %v838_v21  ;;  %1489 = vmatpush.msra.mxu3 %v855_v22  ;;  %v829_v41 = vld [vmem:[%s2351_s3 + $0x10] sm:$0xff]  ;;  %v846_v42 = vld [vmem:[%s2351_s3 + $0x98] sm:$0xff]  ;;  %v33_v43 = vld [vmem:[%s2350_s0 + $0x68] sm:$0xff] }
  0x10   :  { %865 = vmatpush.msrb.mxu0 %v840_v17  ;;  %1071 = vmatpush.msrb.mxu1 %v856_v20  ;;  %v828_v44 = vld [vmem:[%s2351_s3 + $0x8] sm:$0xff]  ;;  %v845_v45 = vld [vmem:[%s2351_s3 + $0x90] sm:$0xff]  ;;  %v827_v46 = vld [vmem:[%s2351_s3] sm:$0xff] }
  0x11   :  { %1475 = vmatpush.msra.mxu2 %v837_v23  ;;  %1490 = vmatpush.msra.mxu3 %v854_v24  ;;  %v844_v47 = vld [vmem:[%s2351_s3 + $0x88] sm:$0xff]  ;;  %v843_v48 = vld [vmem:[%s2351_s3 + $0x80] sm:$0xff]  ;;  %v34_v49 = vld [vmem:[%s2350_s0 + $0x70] sm:$0xff] }
  0x12   :  { %866 = vmatpush.msrb.mxu0 %v839_v19  ;;  %1072 = vmatpush.msrb.mxu1 %v855_v22  ;;  %v35_v50 = vld [vmem:[%s2350_s0 + $0x78] sm:$0xff]  ;;  %v36_v53 = vld [vmem:[%s2350_s0 + $0x80] sm:$0xff]  ;;  %v37_v59 = vld [vmem:[%s2350_s0 + $0x88] sm:$0xff] }
  0x13   :  { %1344 = vmatmul.msk.f32.gmra.mxu0 %vm94_vm1, %v21_v4  ;;  %1408 = vmatmul.msk.f32.gmra.mxu1 %vm94_vm1, %v21_v4  ;;  %v84_v54 = vld [vmem:[%s2352_s2] sm:$0x3]  ;;  %v38_v2 = vld [vmem:[%s2350_s0 + $0x90] sm:$0xff] }
  0x14   :  { %867 = vmatpush.msrb.mxu0 %v838_v21  ;;  %1073 = vmatpush.msrb.mxu1 %v854_v24  ;;  %v1725_v55 = vperm.slane %v84_v54, 0  ;;  %v1727_v56 = vperm.slane %v84_v54, 1  ;;  %v40_v16 = vld [vmem:[%s2350_s0 + $0xa0] sm:$0xff] }
  0x15   :  { %1476 = vmatpush.msra.mxu2 %v836_v25  ;;  %1491 = vmatpush.msra.mxu3 %v853_v26 }
  0x16   :  { %868 = vmatpush.msrb.mxu0 %v837_v23  ;;  %1074 = vmatpush.msrb.mxu1 %v853_v26  ;;  %v41_v23 = vld [vmem:[%s2350_s0 + $0xa8] sm:$0xff] }
  0x17   :  { %1477 = vmatpush.msra.mxu2 %v835_v28  ;;  %1492 = vmatpush.msra.mxu3 %v852_v29 }
  0x18   :  { %869 = vmatpush.msrb.mxu0 %v836_v25  ;;  %1075 = vmatpush.msrb.mxu1 %v852_v29 }
  0x19   :  { %1478 = vmatpush.msra.mxu2 %v834_v30  ;;  %1493 = vmatpush.msra.mxu3 %v851_v31 }
  0x1a   :  { %870 = vmatpush.msrb.mxu0 %v835_v28  ;;  %1076 = vmatpush.msrb.mxu1 %v851_v31 }
  0x1b   :  { %1345 = vmatmul.msk.f32.gmra.mxu0 %vm94_vm1, %v22_v5  ;;  %1409 = vmatmul.msk.f32.gmra.mxu1 %vm94_vm1, %v22_v5 }
  0x1c   :  { %1479 = vmatpush.msra.mxu2 %v833_v32  ;;  %1494 = vmatpush.msra.mxu3 %v850_v33 }
  0x1d   :  { %871 = vmatpush.msrb.mxu0 %v834_v30  ;;  %1077 = vmatpush.msrb.mxu1 %v850_v33  ;;  %v42_v30 = vld [vmem:[%s2350_s0 + $0xb0] sm:$0xff] }
  0x1e   :  { %1480 = vmatpush.msra.mxu2 %v832_v35  ;;  %1495 = vmatpush.msra.mxu3 %v849_v36 }
  0x1f   :  { %872 = vmatpush.msrb.mxu0 %v833_v32  ;;  %1078 = vmatpush.msrb.mxu1 %v849_v36 }
  0x20   :  { %1481 = vmatpush.msra.mxu2 %v831_v37  ;;  %1496 = vmatpush.msra.mxu3 %v848_v38 }
  0x21   :  { %873 = vmatpush.msrb.mxu0 %v832_v35  ;;  %1079 = vmatpush.msrb.mxu1 %v848_v38 }
  0x22   :  { %1482 = vmatpush.msra.mxu2 %v830_v39  ;;  %1497 = vmatpush.msra.mxu3 %v847_v40 }
  0x23   :  { %1346 = vmatmul.msk.f32.gmra.mxu0 %vm94_vm1, %v23_v6  ;;  %1410 = vmatmul.msk.f32.gmra.mxu1 %vm94_vm1, %v23_v6 }
  0x24   :  { %1483 = vmatpush.msra.mxu2 %v829_v41  ;;  %1498 = vmatpush.msra.mxu3 %v846_v42 }
  0x25   :  { %874 = vmatpush.msrb.mxu0 %v831_v37  ;;  %1080 = vmatpush.msrb.mxu1 %v847_v40  ;;  %v43_v37 = vld [vmem:[%s2350_s0 + $0xb8] sm:$0xff] }
  0x26   :  { %1484 = vmatpush.msra.mxu2 %v828_v44  ;;  %1499 = vmatpush.msra.mxu3 %v845_v45 }
  0x27   :  { %875 = vmatpush.msrb.mxu0 %v830_v39  ;;  %1081 = vmatpush.msrb.mxu1 %v846_v42 }
  0x28   :  { %1485 = vmatpush.msra.mxu2 %v827_v46  ;;  %1500 = vmatpush.msra.mxu3 %v844_v47 }
  0x29   :  { %876 = vmatpush.msrb.mxu0 %v829_v41  ;;  %1082 = vmatpush.msrb.mxu1 %v845_v45 }
  0x2a   :  { %1501 = vmatpush.msra.mxu3 %v843_v48 }
  0x2b   :  { %1347 = vmatmul.msk.f32.gmra.mxu0 %vm94_vm1, %v24_v7  ;;  %1411 = vmatmul.msk.f32.gmra.mxu1 %vm94_vm1, %v24_v7 }
  0x2c   :  { %877 = vmatpush.msrb.mxu0 %v828_v44  ;;  %1083 = vmatpush.msrb.mxu1 %v844_v47  ;;  %v44_v44 = vld [vmem:[%s2350_s0 + $0xc0] sm:$0xff] }
  0x2e   :  { %878 = vmatpush.msrb.mxu0 %v827_v46  ;;  %1084 = vmatpush.msrb.mxu1 %v843_v48 }
  0x33   :  { %1348 = vmatmul.msk.f32.gmra.mxu0 %vm94_vm1, %v25_v8  ;;  %1412 = vmatmul.msk.f32.gmra.mxu1 %vm94_vm1, %v25_v8 }
  0x3b   :  { %1349 = vmatmul.msk.f32.gmra.mxu0 %vm94_vm1, %v26_v9  ;;  %1413 = vmatmul.msk.f32.gmra.mxu1 %vm94_vm1, %v26_v9  ;;  %v39_v9 = vld [vmem:[%s2350_s0 + $0x98] sm:$0xff] }
  0x43   :  { %1350 = vmatmul.msk.f32.gmra.mxu0 %vm94_vm1, %v27_v10  ;;  %1414 = vmatmul.msk.f32.gmra.mxu1 %vm94_vm1, %v27_v10 }
  0x4b   :  { %1351 = vmatmul.msk.f32.gmra.mxu0 %vm94_vm1, %v28_v11  ;;  %1415 = vmatmul.msk.f32.gmra.mxu1 %vm94_vm1, %v28_v11 }
  0x53   :  { %1352 = vmatmul.msk.f32.gmra.mxu0 %vm94_vm1, %v29_v12  ;;  %1416 = vmatmul.msk.f32.gmra.mxu1 %vm94_vm1, %v29_v12 }
  0x5b   :  { %1353 = vmatmul.msk.f32.gmra.mxu0 %vm94_vm1, %v30_v18  ;;  %1417 = vmatmul.msk.f32.gmra.mxu1 %vm94_vm1, %v30_v18 }
  0x63   :  { %1354 = vmatmul.msk.f32.gmra.mxu0 %vm94_vm1, %v31_v27  ;;  %1418 = vmatmul.msk.f32.gmra.mxu1 %vm94_vm1, %v31_v27 }
  0x6b   :  { %1355 = vmatmul.msk.f32.gmra.mxu0 %vm94_vm1, %v32_v34  ;;  %1419 = vmatmul.msk.f32.gmra.mxu1 %vm94_vm1, %v32_v34 }
  0x73   :  { %1356 = vmatmul.msk.f32.gmra.mxu0 %vm94_vm1, %v33_v43  ;;  %1420 = vmatmul.msk.f32.gmra.mxu1 %vm94_vm1, %v33_v43 }
  0x7b   :  { %1357 = vmatmul.msk.f32.gmra.mxu0 %vm94_vm1, %v34_v49  ;;  %1421 = vmatmul.msk.f32.gmra.mxu1 %vm94_vm1, %v34_v49 }
  0x83   :  { %1358 = vmatmul.msk.f32.gmra.mxu0 %vm94_vm1, %v35_v50  ;;  %1422 = vmatmul.msk.f32.gmra.mxu1 %vm94_vm1, %v35_v50 }
  0x88   :  { %v1713_v51 = vpop.f32.mrf.mxu0  ;;  %v1715_v52 = vpop.f32.mrf.mxu1 }
  0x8b   :  { %1359 = vmatmul.msk.f32.gmra.mxu0 %vm94_vm1, %v36_v53  ;;  %1423 = vmatmul.msk.f32.gmra.mxu1 %vm94_vm1, %v36_v53  ;;  %v45_v53 = vld [vmem:[%s2350_s0 + $0xc8] sm:$0xff] }
  0x90   :  { %v309_v57 = vpop.f32.mrf.mxu0  ;;  %v515_v58 = vpop.f32.mrf.mxu1 }
  0x91   :  { %v310_v60 = vadd.f32 %v309_v57, %v1725_v55  ;;  %v516_v61 = vadd.f32 %v515_v58, %v1727_v56 }
  0x93   :  { %1360 = vmatmul.msk.f32.gmra.mxu0 %vm94_vm1, %v37_v59  ;;  %1424 = vmatmul.msk.f32.gmra.mxu1 %vm94_vm1, %v37_v59  ;;  %v703_v62 = vmax.f32 %v310_v60, 0.0  ;;  %v704_v63 = vmax.f32 %v516_v61, 0.0 }
  0x95   :  { %882 = vmatmul.f32.vlgmr.msra.gmra.mxu2 %v703_v62  ;;  %1088 = vmatmul.f32.vlgmr.msra.gmra.mxu3 %v704_v63  ;;  %v46_v62 = vld [vmem:[%s2350_s0 + $0xd0] sm:$0xff] }
  0x98   :  { %v312_v0 = vpop.f32.mrf.mxu0  ;;  %v518_v1 = vpop.f32.mrf.mxu1 }
  0x99   :  { %v313_v3 = vadd.f32 %v312_v0, %v1725_v55  ;;  %v519_v4 = vadd.f32 %v518_v1, %v1727_v56 }
  0x9b   :  { %1361 = vmatmul.msk.f32.gmra.mxu0 %vm94_vm1, %v38_v2  ;;  %1425 = vmatmul.msk.f32.gmra.mxu1 %vm94_vm1, %v38_v2  ;;  %v705_v5 = vmax.f32 %v313_v3, 0.0  ;;  %v706_v6 = vmax.f32 %v519_v4, 0.0 }
  0x9d   :  { %885 = vmatmul.f32.gmra.mxu2 %v705_v5  ;;  %1091 = vmatmul.f32.gmra.mxu3 %v706_v6  ;;  %v47_v5 = vld [vmem:[%s2350_s0 + $0xd8] sm:$0xff] }
  0xa0   :  { %v315_v7 = vpop.f32.mrf.mxu0  ;;  %v521_v8 = vpop.f32.mrf.mxu1 }
  0xa1   :  { %v316_v10 = vadd.f32 %v315_v7, %v1725_v55  ;;  %v522_v11 = vadd.f32 %v521_v8, %v1727_v56 }
  0xa3   :  { %1362 = vmatmul.msk.f32.gmra.mxu0 %vm94_vm1, %v39_v9  ;;  %1426 = vmatmul.msk.f32.gmra.mxu1 %vm94_vm1, %v39_v9  ;;  %v707_v12 = vmax.f32 %v316_v10, 0.0  ;;  %v708_v13 = vmax.f32 %v522_v11, 0.0 }
  0xa5   :  { %888 = vmatmul.f32.gmra.mxu2 %v707_v12  ;;  %1094 = vmatmul.f32.gmra.mxu3 %v708_v13  ;;  %v48_v12 = vld [vmem:[%s2350_s0 + $0xe0] sm:$0xff] }
  0xa8   :  { %v318_v14 = vpop.f32.mrf.mxu0  ;;  %v524_v15 = vpop.f32.mrf.mxu1 }
  0xa9   :  { %v319_v17 = vadd.f32 %v318_v14, %v1725_v55  ;;  %v525_v18 = vadd.f32 %v524_v15, %v1727_v56 }
  0xab   :  { %1363 = vmatmul.msk.f32.gmra.mxu0 %vm94_vm1, %v40_v16  ;;  %1427 = vmatmul.msk.f32.gmra.mxu1 %vm94_vm1, %v40_v16  ;;  %v709_v19 = vmax.f32 %v319_v17, 0.0  ;;  %v710_v20 = vmax.f32 %v525_v18, 0.0 }
  0xad   :  { %891 = vmatmul.f32.gmra.mxu2 %v709_v19  ;;  %1097 = vmatmul.f32.gmra.mxu3 %v710_v20  ;;  %v49_v19 = vld [vmem:[%s2350_s0 + $0xe8] sm:$0xff] }
  0xb0   :  { %v321_v21 = vpop.f32.mrf.mxu0  ;;  %v527_v22 = vpop.f32.mrf.mxu1 }
  0xb1   :  { %v322_v24 = vadd.f32 %v321_v21, %v1725_v55  ;;  %v528_v25 = vadd.f32 %v527_v22, %v1727_v56 }
  0xb3   :  { %1364 = vmatmul.msk.f32.gmra.mxu0 %vm94_vm1, %v41_v23  ;;  %1428 = vmatmul.msk.f32.gmra.mxu1 %vm94_vm1, %v41_v23  ;;  %v711_v26 = vmax.f32 %v322_v24, 0.0  ;;  %v712_v27 = vmax.f32 %v528_v25, 0.0 }
  0xb5   :  { %894 = vmatmul.f32.gmra.mxu2 %v711_v26  ;;  %1100 = vmatmul.f32.gmra.mxu3 %v712_v27  ;;  %v50_v26 = vld [vmem:[%s2350_s0 + $0xf0] sm:$0xff] }
  0xb8   :  { %v324_v28 = vpop.f32.mrf.mxu0  ;;  %v530_v29 = vpop.f32.mrf.mxu1 }
  0xb9   :  { %v325_v31 = vadd.f32 %v324_v28, %v1725_v55  ;;  %v531_v32 = vadd.f32 %v530_v29, %v1727_v56 }
  0xbb   :  { %1365 = vmatmul.msk.f32.gmra.mxu0 %vm94_vm1, %v42_v30  ;;  %1429 = vmatmul.msk.f32.gmra.mxu1 %vm94_vm1, %v42_v30  ;;  %v713_v33 = vmax.f32 %v325_v31, 0.0  ;;  %v714_v34 = vmax.f32 %v531_v32, 0.0 }
  0xbd   :  { %897 = vmatmul.f32.gmra.mxu2 %v713_v33  ;;  %1103 = vmatmul.f32.gmra.mxu3 %v714_v34  ;;  %v51_v33 = vld [vmem:[%s2350_s0 + $0xf8] sm:$0xff] }
  0xc0   :  { %v327_v35 = vpop.f32.mrf.mxu0  ;;  %v533_v36 = vpop.f32.mrf.mxu1 }
  0xc1   :  { %v328_v38 = vadd.f32 %v327_v35, %v1725_v55  ;;  %v534_v39 = vadd.f32 %v533_v36, %v1727_v56 }
  0xc3   :  { %1366 = vmatmul.msk.f32.gmra.mxu0 %vm94_vm1, %v43_v37  ;;  %1430 = vmatmul.msk.f32.gmra.mxu1 %vm94_vm1, %v43_v37  ;;  %v715_v40 = vmax.f32 %v328_v38, 0.0  ;;  %v716_v41 = vmax.f32 %v534_v39, 0.0 }
  0xc5   :  { %900 = vmatmul.f32.gmra.mxu2 %v715_v40  ;;  %1106 = vmatmul.f32.gmra.mxu3 %v716_v41  ;;  %v52_v40 = vld [vmem:[%s2350_s0 + $0x100] sm:$0xff] }
  0xc8   :  { %v330_v42 = vpop.f32.mrf.mxu0  ;;  %v536_v43 = vpop.f32.mrf.mxu1 }
  0xc9   :  { %v331_v45 = vadd.f32 %v330_v42, %v1725_v55  ;;  %v537_v46 = vadd.f32 %v536_v43, %v1727_v56 }
  0xcb   :  { %1367 = vmatmul.msk.f32.gmra.mxu0 %vm94_vm1, %v44_v44  ;;  %1431 = vmatmul.msk.f32.gmra.mxu1 %vm94_vm1, %v44_v44  ;;  %v717_v47 = vmax.f32 %v331_v45, 0.0  ;;  %v718_v48 = vmax.f32 %v537_v46, 0.0 }
  0xcd   :  { %903 = vmatmul.f32.gmra.mxu2 %v717_v47  ;;  %1109 = vmatmul.f32.gmra.mxu3 %v718_v48  ;;  %v53_v47 = vld [vmem:[%s2350_s0 + $0x108] sm:$0xff] }
  0xd0   :  { %v333_v49 = vpop.f32.mrf.mxu0  ;;  %v539_v50 = vpop.f32.mrf.mxu1 }
  0xd1   :  { %v334_v54 = vadd.f32 %v333_v49, %v1725_v55  ;;  %v540_v57 = vadd.f32 %v539_v50, %v1727_v56 }
  0xd3   :  { %1368 = vmatmul.msk.f32.gmra.mxu0 %vm94_vm1, %v45_v53  ;;  %1432 = vmatmul.msk.f32.gmra.mxu1 %vm94_vm1, %v45_v53  ;;  %v719_v58 = vmax.f32 %v334_v54, 0.0  ;;  %v720_v59 = vmax.f32 %v540_v57, 0.0  ;;  %v1851_v54 = vld [vmem:[%s2353_s4] ss:$0 sm:$0xff] }
  0xd5   :  { %906 = vmatmul.f32.gmra.mxu2 %v719_v58  ;;  %1112 = vmatmul.f32.gmra.mxu3 %v720_v59  ;;  %v54_v59 = vld [vmem:[%s2350_s0 + $0x110] sm:$0xff] }
  0xd8   :  { %v336_v60 = vpop.f32.mrf.mxu0  ;;  %v542_v61 = vpop.f32.mrf.mxu1 }
  0xd9   :  { %v337_v63 = vadd.f32 %v336_v60, %v1725_v55  ;;  %v543_v0 = vadd.f32 %v542_v61, %v1727_v56 }
  0xdb   :  { %1369 = vmatmul.msk.f32.gmra.mxu0 %vm94_vm1, %v46_v62  ;;  %1433 = vmatmul.msk.f32.gmra.mxu1 %vm94_vm1, %v46_v62  ;;  %v721_v1 = vmax.f32 %v337_v63, 0.0  ;;  %v722_v2 = vmax.f32 %v543_v0, 0.0 }
  0xdd   :  { %909 = vmatmul.f32.gmra.mxu2 %v721_v1  ;;  %1115 = vmatmul.f32.gmra.mxu3 %v722_v2 }
  0xe0   :  { %v339_v3 = vpop.f32.mrf.mxu0  ;;  %v545_v4 = vpop.f32.mrf.mxu1 }
  0xe1   :  { %v340_v6 = vadd.f32 %v339_v3, %v1725_v55  ;;  %v546_v7 = vadd.f32 %v545_v4, %v1727_v56 }
  0xe3   :  { %1370 = vmatmul.msk.f32.gmra.mxu0 %vm94_vm1, %v47_v5  ;;  %1434 = vmatmul.msk.f32.gmra.mxu1 %vm94_vm1, %v47_v5  ;;  %v723_v8 = vmax.f32 %v340_v6, 0.0  ;;  %v724_v9 = vmax.f32 %v546_v7, 0.0  ;;  %v55_v6 = vld [vmem:[%s2350_s0 + $0x118] sm:$0xff] }
  0xe5   :  { %912 = vmatmul.f32.gmra.mxu2 %v723_v8  ;;  %1118 = vmatmul.f32.gmra.mxu3 %v724_v9 }
  0xe8   :  { %v342_v10 = vpop.f32.mrf.mxu0  ;;  %v548_v11 = vpop.f32.mrf.mxu1 }
  0xe9   :  { %v343_v13 = vadd.f32 %v342_v10, %v1725_v55  ;;  %v549_v14 = vadd.f32 %v548_v11, %v1727_v56 }
  0xeb   :  { %1371 = vmatmul.msk.f32.gmra.mxu0 %vm94_vm1, %v48_v12  ;;  %1435 = vmatmul.msk.f32.gmra.mxu1 %vm94_vm1, %v48_v12  ;;  %v725_v15 = vmax.f32 %v343_v13, 0.0  ;;  %v726_v16 = vmax.f32 %v549_v14, 0.0 }
  0xed   :  { %915 = vmatmul.f32.gmra.mxu2 %v725_v15  ;;  %1121 = vmatmul.f32.gmra.mxu3 %v726_v16 }
  0xf0   :  { %v345_v17 = vpop.f32.mrf.mxu0  ;;  %v551_v18 = vpop.f32.mrf.mxu1 }
  0xf1   :  { %v346_v20 = vadd.f32 %v345_v17, %v1725_v55  ;;  %v552_v21 = vadd.f32 %v551_v18, %v1727_v56  ;;  %v56_v17 = vld [vmem:[%s2350_s0 + $0x120] sm:$0xff] }
  0xf3   :  { %1372 = vmatmul.msk.f32.gmra.mxu0 %vm94_vm1, %v49_v19  ;;  %1436 = vmatmul.msk.f32.gmra.mxu1 %vm94_vm1, %v49_v19  ;;  %v727_v22 = vmax.f32 %v346_v20, 0.0  ;;  %v728_v23 = vmax.f32 %v552_v21, 0.0 }
  0xf5   :  { %918 = vmatmul.f32.gmra.mxu2 %v727_v22  ;;  %1124 = vmatmul.f32.gmra.mxu3 %v728_v23 }
  0xf8   :  { %v348_v24 = vpop.f32.mrf.mxu0  ;;  %v554_v25 = vpop.f32.mrf.mxu1 }
  0xf9   :  { %v349_v27 = vadd.f32 %v348_v24, %v1725_v55  ;;  %v555_v28 = vadd.f32 %v554_v25, %v1727_v56 }
  0xfb   :  { %1373 = vmatmul.msk.f32.gmra.mxu0 %vm94_vm1, %v50_v26  ;;  %1437 = vmatmul.msk.f32.gmra.mxu1 %vm94_vm1, %v50_v26  ;;  %v729_v29 = vmax.f32 %v349_v27, 0.0  ;;  %v730_v30 = vmax.f32 %v555_v28, 0.0  ;;  %v57_v28 = vld [vmem:[%s2350_s0 + $0x128] sm:$0xff] }
  0xfd   :  { %921 = vmatmul.f32.gmra.mxu2 %v729_v29  ;;  %1127 = vmatmul.f32.gmra.mxu3 %v730_v30 }
 0x100   :  { %v351_v31 = vpop.f32.mrf.mxu0  ;;  %v557_v32 = vpop.f32.mrf.mxu1 }
 0x101   :  { %v352_v34 = vadd.f32 %v351_v31, %v1725_v55  ;;  %v558_v35 = vadd.f32 %v557_v32, %v1727_v56 }
 0x103   :  { %1374 = vmatmul.msk.f32.gmra.mxu0 %vm94_vm1, %v51_v33  ;;  %1438 = vmatmul.msk.f32.gmra.mxu1 %vm94_vm1, %v51_v33  ;;  %v731_v36 = vmax.f32 %v352_v34, 0.0  ;;  %v732_v37 = vmax.f32 %v558_v35, 0.0 }
 0x105   :  { %924 = vmatmul.f32.gmra.mxu2 %v731_v36  ;;  %1130 = vmatmul.f32.gmra.mxu3 %v732_v37 }
 0x108   :  { %v354_v38 = vpop.f32.mrf.mxu0  ;;  %v560_v39 = vpop.f32.mrf.mxu1 }
 0x109   :  { %v355_v41 = vadd.f32 %v354_v38, %v1725_v55  ;;  %v561_v42 = vadd.f32 %v560_v39, %v1727_v56  ;;  %v58_v39 = vld [vmem:[%s2350_s0 + $0x130] sm:$0xff] }
 0x10b   :  { %1375 = vmatmul.msk.f32.gmra.mxu0 %vm94_vm1, %v52_v40  ;;  %1439 = vmatmul.msk.f32.gmra.mxu1 %vm94_vm1, %v52_v40  ;;  %v733_v43 = vmax.f32 %v355_v41, 0.0  ;;  %v734_v44 = vmax.f32 %v561_v42, 0.0 }
 0x10d   :  { %927 = vmatmul.f32.gmra.mxu2 %v733_v43  ;;  %1133 = vmatmul.f32.gmra.mxu3 %v734_v44 }
 0x110   :  { %v357_v45 = vpop.f32.mrf.mxu0  ;;  %v563_v46 = vpop.f32.mrf.mxu1 }
 0x111   :  { %v358_v48 = vadd.f32 %v357_v45, %v1725_v55  ;;  %v564_v49 = vadd.f32 %v563_v46, %v1727_v56 }
 0x113   :  { %1376 = vmatmul.msk.f32.gmra.mxu0 %vm94_vm1, %v53_v47  ;;  %1440 = vmatmul.msk.f32.gmra.mxu1 %vm94_vm1, %v53_v47  ;;  %v735_v50 = vmax.f32 %v358_v48, 0.0  ;;  %v736_v53 = vmax.f32 %v564_v49, 0.0 }
 0x115   :  { %930 = vmatmul.f32.gmra.mxu2 %v735_v50  ;;  %1136 = vmatmul.f32.gmra.mxu3 %v736_v53  ;;  %v59_v50 = vld [vmem:[%s2350_s0 + $0x138] sm:$0xff] }
 0x118   :  { %v360_v57 = vpop.f32.mrf.mxu0  ;;  %v566_v58 = vpop.f32.mrf.mxu1 }
 0x119   :  { %v361_v60 = vadd.f32 %v360_v57, %v1725_v55  ;;  %v567_v61 = vadd.f32 %v566_v58, %v1727_v56  ;;  %v883_v62 = vpop.f32.mrf.mxu2  ;;  %v1089_v63 = vpop.f32.mrf.mxu3 }
 0x11a   :  { %v884_v0 = vadd.f32 %v1851_v54, %v883_v62 }
 0x11b   :  { %1377 = vmatmul.msk.f32.gmra.mxu0 %vm94_vm1, %v54_v59  ;;  %1441 = vmatmul.msk.f32.gmra.mxu1 %vm94_vm1, %v54_v59  ;;  %v737_v1 = vmax.f32 %v361_v60, 0.0  ;;  %v738_v2 = vmax.f32 %v567_v61, 0.0 }
 0x11c   :  { %v1090_v3 = vadd.f32 %v1089_v63, %v884_v0 }
 0x11d   :  { %933 = vmatmul.f32.gmra.mxu2 %v737_v1  ;;  %1139 = vmatmul.f32.gmra.mxu3 %v738_v2  ;;  %v60_v2 = vld [vmem:[%s2350_s0 + $0x140] sm:$0xff] }
 0x11e   :  { %1276 = vst [vmem:[%s2354_s5 + $0x8] sm:$0xff] %v1090_v3 }
 0x120   :  { %v363_v4 = vpop.f32.mrf.mxu0  ;;  %v569_v5 = vpop.f32.mrf.mxu1 }
 0x121   :  { %v364_v7 = vadd.f32 %v363_v4, %v1725_v55  ;;  %v570_v8 = vadd.f32 %v569_v5, %v1727_v56  ;;  %v886_v9 = vpop.f32.mrf.mxu2  ;;  %v1092_v10 = vpop.f32.mrf.mxu3 }
 0x122   :  { %v887_v11 = vadd.f32 %v1851_v54, %v886_v9 }
 0x123   :  { %1378 = vmatmul.msk.f32.gmra.mxu0 %vm94_vm1, %v55_v6  ;;  %1442 = vmatmul.msk.f32.gmra.mxu1 %vm94_vm1, %v55_v6  ;;  %v739_v12 = vmax.f32 %v364_v7, 0.0  ;;  %v740_v13 = vmax.f32 %v570_v8, 0.0 }
 0x124   :  { %v1093_v14 = vadd.f32 %v1092_v10, %v887_v11 }
 0x125   :  { %936 = vmatmul.f32.gmra.mxu2 %v739_v12  ;;  %1142 = vmatmul.f32.gmra.mxu3 %v740_v13  ;;  %v61_v13 = vld [vmem:[%s2350_s0 + $0x148] sm:$0xff] }
 0x126   :  { %1277 = vst [vmem:[%s2354_s5 + $0x10] sm:$0xff] %v1093_v14 }
 0x128   :  { %v366_v15 = vpop.f32.mrf.mxu0  ;;  %v572_v16 = vpop.f32.mrf.mxu1 }
 0x129   :  { %v367_v18 = vadd.f32 %v366_v15, %v1725_v55  ;;  %v573_v19 = vadd.f32 %v572_v16, %v1727_v56  ;;  %v889_v20 = vpop.f32.mrf.mxu2  ;;  %v1095_v21 = vpop.f32.mrf.mxu3 }
 0x12a   :  { %v890_v22 = vadd.f32 %v1851_v54, %v889_v20 }
 0x12b   :  { %1379 = vmatmul.msk.f32.gmra.mxu0 %vm94_vm1, %v56_v17  ;;  %1443 = vmatmul.msk.f32.gmra.mxu1 %vm94_vm1, %v56_v17  ;;  %v741_v23 = vmax.f32 %v367_v18, 0.0  ;;  %v742_v24 = vmax.f32 %v573_v19, 0.0 }
 0x12c   :  { %v1096_v25 = vadd.f32 %v1095_v21, %v890_v22 }
 0x12d   :  { %939 = vmatmul.f32.gmra.mxu2 %v741_v23  ;;  %1145 = vmatmul.f32.gmra.mxu3 %v742_v24  ;;  %v62_v24 = vld [vmem:[%s2350_s0 + $0x150] sm:$0xff] }
 0x12e   :  { %1278 = vst [vmem:[%s2354_s5 + $0x18] sm:$0xff] %v1096_v25 }
 0x130   :  { %v369_v26 = vpop.f32.mrf.mxu0  ;;  %v575_v27 = vpop.f32.mrf.mxu1 }
 0x131   :  { %v370_v29 = vadd.f32 %v369_v26, %v1725_v55  ;;  %v576_v30 = vadd.f32 %v575_v27, %v1727_v56  ;;  %v892_v31 = vpop.f32.mrf.mxu2  ;;  %v1098_v32 = vpop.f32.mrf.mxu3 }
 0x132   :  { %v893_v33 = vadd.f32 %v1851_v54, %v892_v31 }
 0x133   :  { %1380 = vmatmul.msk.f32.gmra.mxu0 %vm94_vm1, %v57_v28  ;;  %1444 = vmatmul.msk.f32.gmra.mxu1 %vm94_vm1, %v57_v28  ;;  %v743_v34 = vmax.f32 %v370_v29, 0.0  ;;  %v744_v35 = vmax.f32 %v576_v30, 0.0 }
 0x134   :  { %v1099_v36 = vadd.f32 %v1098_v32, %v893_v33 }
 0x135   :  { %942 = vmatmul.f32.gmra.mxu2 %v743_v34  ;;  %1148 = vmatmul.f32.gmra.mxu3 %v744_v35  ;;  %v63_v35 = vld [vmem:[%s2350_s0 + $0x158] sm:$0xff] }
 0x136   :  { %1279 = vst [vmem:[%s2354_s5 + $0x20] sm:$0xff] %v1099_v36 }
 0x138   :  { %v372_v37 = vpop.f32.mrf.mxu0  ;;  %v578_v38 = vpop.f32.mrf.mxu1 }
 0x139   :  { %v373_v40 = vadd.f32 %v372_v37, %v1725_v55  ;;  %v579_v41 = vadd.f32 %v578_v38, %v1727_v56  ;;  %v895_v42 = vpop.f32.mrf.mxu2  ;;  %v1101_v43 = vpop.f32.mrf.mxu3 }
 0x13a   :  { %v896_v44 = vadd.f32 %v1851_v54, %v895_v42 }
 0x13b   :  { %1381 = vmatmul.msk.f32.gmra.mxu0 %vm94_vm1, %v58_v39  ;;  %1445 = vmatmul.msk.f32.gmra.mxu1 %vm94_vm1, %v58_v39  ;;  %v745_v45 = vmax.f32 %v373_v40, 0.0  ;;  %v746_v46 = vmax.f32 %v579_v41, 0.0 }
 0x13c   :  { %v1102_v47 = vadd.f32 %v1101_v43, %v896_v44 }
 0x13d   :  { %945 = vmatmul.f32.gmra.mxu2 %v745_v45  ;;  %1151 = vmatmul.f32.gmra.mxu3 %v746_v46  ;;  %v64_v46 = vld [vmem:[%s2350_s0 + $0x160] sm:$0xff] }
 0x13e   :  { %1280 = vst [vmem:[%s2354_s5 + $0x28] sm:$0xff] %v1102_v47 }
 0x140   :  { %v375_v48 = vpop.f32.mrf.mxu0  ;;  %v581_v49 = vpop.f32.mrf.mxu1 }
 0x141   :  { %v376_v53 = vadd.f32 %v375_v48, %v1725_v55  ;;  %v582_v57 = vadd.f32 %v581_v49, %v1727_v56  ;;  %v898_v58 = vpop.f32.mrf.mxu2  ;;  %v1104_v59 = vpop.f32.mrf.mxu3 }
 0x142   :  { %v899_v60 = vadd.f32 %v1851_v54, %v898_v58 }
 0x143   :  { %1382 = vmatmul.msk.f32.gmra.mxu0 %vm94_vm1, %v59_v50  ;;  %1446 = vmatmul.msk.f32.gmra.mxu1 %vm94_vm1, %v59_v50  ;;  %v747_v61 = vmax.f32 %v376_v53, 0.0  ;;  %v748_v62 = vmax.f32 %v582_v57, 0.0 }
 0x144   :  { %v1105_v63 = vadd.f32 %v1104_v59, %v899_v60 }
 0x145   :  { %948 = vmatmul.f32.gmra.mxu2 %v747_v61  ;;  %1154 = vmatmul.f32.gmra.mxu3 %v748_v62  ;;  %v65_v62 = vld [vmem:[%s2350_s0 + $0x168] sm:$0xff] }
 0x146   :  { %1281 = vst [vmem:[%s2354_s5 + $0x30] sm:$0xff] %v1105_v63 }
 0x148   :  { %v378_v0 = vpop.f32.mrf.mxu0  ;;  %v584_v1 = vpop.f32.mrf.mxu1 }
 0x149   :  { %v379_v3 = vadd.f32 %v378_v0, %v1725_v55  ;;  %v585_v4 = vadd.f32 %v584_v1, %v1727_v56  ;;  %v901_v5 = vpop.f32.mrf.mxu2  ;;  %v1107_v6 = vpop.f32.mrf.mxu3 }
 0x14a   :  { %v902_v7 = vadd.f32 %v1851_v54, %v901_v5 }
 0x14b   :  { %1383 = vmatmul.msk.f32.gmra.mxu0 %vm94_vm1, %v60_v2  ;;  %1447 = vmatmul.msk.f32.gmra.mxu1 %vm94_vm1, %v60_v2  ;;  %v749_v8 = vmax.f32 %v379_v3, 0.0  ;;  %v750_v9 = vmax.f32 %v585_v4, 0.0 }
 0x14c   :  { %v1108_v10 = vadd.f32 %v1107_v6, %v902_v7 }
 0x14d   :  { %951 = vmatmul.f32.gmra.mxu2 %v749_v8  ;;  %1157 = vmatmul.f32.gmra.mxu3 %v750_v9  ;;  %v66_v9 = vld [vmem:[%s2350_s0 + $0x170] sm:$0xff] }
 0x14e   :  { %1282 = vst [vmem:[%s2354_s5 + $0x38] sm:$0xff] %v1108_v10 }
 0x150   :  { %v381_v11 = vpop.f32.mrf.mxu0  ;;  %v587_v12 = vpop.f32.mrf.mxu1 }
 0x151   :  { %v382_v14 = vadd.f32 %v381_v11, %v1725_v55  ;;  %v588_v15 = vadd.f32 %v587_v12, %v1727_v56  ;;  %v904_v16 = vpop.f32.mrf.mxu2  ;;  %v1110_v17 = vpop.f32.mrf.mxu3 }
 0x152   :  { %v905_v18 = vadd.f32 %v1851_v54, %v904_v16 }
 0x153   :  { %v751_v19 = vmax.f32 %v382_v14, 0.0  ;;  %v752_v20 = vmax.f32 %v588_v15, 0.0  ;;  %1384 = vmatmul.msk.f32.gmra.mxu0 %vm94_vm1, %v61_v13  ;;  %1448 = vmatmul.msk.f32.gmra.mxu1 %vm94_vm1, %v61_v13 }
 0x154   :  { %v1111_v21 = vadd.f32 %v1110_v17, %v905_v18 }
 0x155   :  { %954 = vmatmul.f32.gmra.mxu2 %v751_v19  ;;  %1160 = vmatmul.f32.gmra.mxu3 %v752_v20  ;;  %v67_v20 = vld [vmem:[%s2350_s0 + $0x178] sm:$0xff] }
 0x156   :  { %1283 = vst [vmem:[%s2354_s5 + $0x40] sm:$0xff] %v1111_v21 }
 0x158   :  { %v384_v22 = vpop.f32.mrf.mxu0  ;;  %v590_v23 = vpop.f32.mrf.mxu1 }
 0x159   :  { %v385_v25 = vadd.f32 %v384_v22, %v1725_v55  ;;  %v591_v26 = vadd.f32 %v590_v23, %v1727_v56  ;;  %v907_v27 = vpop.f32.mrf.mxu2  ;;  %v1113_v28 = vpop.f32.mrf.mxu3 }
 0x15a   :  { %v908_v29 = vadd.f32 %v1851_v54, %v907_v27 }
 0x15b   :  { %v753_v30 = vmax.f32 %v385_v25, 0.0  ;;  %v754_v31 = vmax.f32 %v591_v26, 0.0  ;;  %1385 = vmatmul.msk.f32.gmra.mxu0 %vm94_vm1, %v62_v24  ;;  %1449 = vmatmul.msk.f32.gmra.mxu1 %vm94_vm1, %v62_v24 }
 0x15c   :  { %v1114_v32 = vadd.f32 %v1113_v28, %v908_v29 }
 0x15d   :  { %957 = vmatmul.f32.gmra.mxu2 %v753_v30  ;;  %1163 = vmatmul.f32.gmra.mxu3 %v754_v31  ;;  %v68_v31 = vld [vmem:[%s2350_s0 + $0x180] sm:$0xff] }
 0x15e   :  { %1284 = vst [vmem:[%s2354_s5 + $0x48] sm:$0xff] %v1114_v32 }
 0x160   :  { %v387_v33 = vpop.f32.mrf.mxu0  ;;  %v593_v34 = vpop.f32.mrf.mxu1 }
 0x161   :  { %v388_v36 = vadd.f32 %v387_v33, %v1725_v55  ;;  %v594_v37 = vadd.f32 %v593_v34, %v1727_v56  ;;  %v910_v38 = vpop.f32.mrf.mxu2  ;;  %v1116_v39 = vpop.f32.mrf.mxu3 }
 0x162   :  { %v911_v40 = vadd.f32 %v1851_v54, %v910_v38 }
 0x163   :  { %v755_v41 = vmax.f32 %v388_v36, 0.0  ;;  %v756_v42 = vmax.f32 %v594_v37, 0.0  ;;  %1386 = vmatmul.msk.f32.gmra.mxu0 %vm94_vm1, %v63_v35  ;;  %1450 = vmatmul.msk.f32.gmra.mxu1 %vm94_vm1, %v63_v35 }
 0x164   :  { %v1117_v43 = vadd.f32 %v1116_v39, %v911_v40 }
 0x165   :  { %960 = vmatmul.f32.gmra.mxu2 %v755_v41  ;;  %1166 = vmatmul.f32.gmra.mxu3 %v756_v42  ;;  %v69_v42 = vld [vmem:[%s2350_s0 + $0x188] sm:$0xff] }
 0x166   :  { %1285 = vst [vmem:[%s2354_s5 + $0x50] sm:$0xff] %v1117_v43 }
 0x168   :  { %v390_v44 = vpop.f32.mrf.mxu0  ;;  %v596_v45 = vpop.f32.mrf.mxu1 }
 0x169   :  { %v391_v47 = vadd.f32 %v390_v44, %v1725_v55  ;;  %v597_v48 = vadd.f32 %v596_v45, %v1727_v56  ;;  %v913_v49 = vpop.f32.mrf.mxu2  ;;  %v1119_v50 = vpop.f32.mrf.mxu3 }
 0x16a   :  { %v914_v53 = vadd.f32 %v1851_v54, %v913_v49 }
 0x16b   :  { %v757_v57 = vmax.f32 %v391_v47, 0.0  ;;  %v758_v58 = vmax.f32 %v597_v48, 0.0  ;;  %1387 = vmatmul.msk.f32.gmra.mxu0 %vm94_vm1, %v64_v46  ;;  %1451 = vmatmul.msk.f32.gmra.mxu1 %vm94_vm1, %v64_v46 }
 0x16c   :  { %v1120_v59 = vadd.f32 %v1119_v50, %v914_v53 }
 0x16d   :  { %963 = vmatmul.f32.gmra.mxu2 %v757_v57  ;;  %1169 = vmatmul.f32.gmra.mxu3 %v758_v58  ;;  %v70_v58 = vld [vmem:[%s2350_s0 + $0x190] sm:$0xff] }
 0x16e   :  { %1286 = vst [vmem:[%s2354_s5 + $0x58] sm:$0xff] %v1120_v59 }
 0x170   :  { %v393_v60 = vpop.f32.mrf.mxu0  ;;  %v599_v61 = vpop.f32.mrf.mxu1 }
 0x171   :  { %v394_v63 = vadd.f32 %v393_v60, %v1725_v55  ;;  %v600_v0 = vadd.f32 %v599_v61, %v1727_v56  ;;  %v916_v1 = vpop.f32.mrf.mxu2  ;;  %v1122_v2 = vpop.f32.mrf.mxu3 }
 0x172   :  { %v917_v3 = vadd.f32 %v1851_v54, %v916_v1 }
 0x173   :  { %v759_v4 = vmax.f32 %v394_v63, 0.0  ;;  %v760_v5 = vmax.f32 %v600_v0, 0.0  ;;  %1388 = vmatmul.msk.f32.gmra.mxu0 %vm94_vm1, %v65_v62  ;;  %1452 = vmatmul.msk.f32.gmra.mxu1 %vm94_vm1, %v65_v62 }
 0x174   :  { %v1123_v6 = vadd.f32 %v1122_v2, %v917_v3 }
 0x175   :  { %966 = vmatmul.f32.gmra.mxu2 %v759_v4  ;;  %1172 = vmatmul.f32.gmra.mxu3 %v760_v5  ;;  %v71_v5 = vld [vmem:[%s2350_s0 + $0x198] sm:$0xff] }
 0x176   :  { %1287 = vst [vmem:[%s2354_s5 + $0x60] sm:$0xff] %v1123_v6 }
 0x178   :  { %v396_v7 = vpop.f32.mrf.mxu0  ;;  %v602_v8 = vpop.f32.mrf.mxu1 }
 0x179   :  { %v397_v10 = vadd.f32 %v396_v7, %v1725_v55  ;;  %v603_v11 = vadd.f32 %v602_v8, %v1727_v56  ;;  %v919_v12 = vpop.f32.mrf.mxu2  ;;  %v1125_v13 = vpop.f32.mrf.mxu3 }
 0x17a   :  { %v920_v14 = vadd.f32 %v1851_v54, %v919_v12 }
 0x17b   :  { %v761_v15 = vmax.f32 %v397_v10, 0.0  ;;  %v762_v16 = vmax.f32 %v603_v11, 0.0  ;;  %1389 = vmatmul.msk.f32.gmra.mxu0 %vm94_vm1, %v66_v9  ;;  %1453 = vmatmul.msk.f32.gmra.mxu1 %vm94_vm1, %v66_v9 }
 0x17c   :  { %v1126_v17 = vadd.f32 %v1125_v13, %v920_v14 }
 0x17d   :  { %969 = vmatmul.f32.gmra.mxu2 %v761_v15  ;;  %1175 = vmatmul.f32.gmra.mxu3 %v762_v16  ;;  %v72_v16 = vld [vmem:[%s2350_s0 + $0x1a0] sm:$0xff] }
 0x17e   :  { %1288 = vst [vmem:[%s2354_s5 + $0x68] sm:$0xff] %v1126_v17 }
 0x180   :  { %v399_v18 = vpop.f32.mrf.mxu0  ;;  %v605_v19 = vpop.f32.mrf.mxu1 }
 0x181   :  { %v400_v21 = vadd.f32 %v399_v18, %v1725_v55  ;;  %v606_v22 = vadd.f32 %v605_v19, %v1727_v56  ;;  %v922_v23 = vpop.f32.mrf.mxu2  ;;  %v1128_v24 = vpop.f32.mrf.mxu3 }
 0x182   :  { %v923_v25 = vadd.f32 %v1851_v54, %v922_v23 }
 0x183   :  { %v763_v26 = vmax.f32 %v400_v21, 0.0  ;;  %v764_v27 = vmax.f32 %v606_v22, 0.0  ;;  %1390 = vmatmul.msk.f32.gmra.mxu0 %vm94_vm1, %v67_v20  ;;  %1454 = vmatmul.msk.f32.gmra.mxu1 %vm94_vm1, %v67_v20 }
 0x184   :  { %v1129_v28 = vadd.f32 %v1128_v24, %v923_v25 }
 0x185   :  { %972 = vmatmul.f32.gmra.mxu2 %v763_v26  ;;  %1178 = vmatmul.f32.gmra.mxu3 %v764_v27  ;;  %v73_v27 = vld [vmem:[%s2350_s0 + $0x1a8] sm:$0xff] }
 0x186   :  { %1289 = vst [vmem:[%s2354_s5 + $0x70] sm:$0xff] %v1129_v28 }
 0x188   :  { %v402_v29 = vpop.f32.mrf.mxu0  ;;  %v608_v30 = vpop.f32.mrf.mxu1 }
 0x189   :  { %v403_v32 = vadd.f32 %v402_v29, %v1725_v55  ;;  %v609_v33 = vadd.f32 %v608_v30, %v1727_v56  ;;  %v925_v34 = vpop.f32.mrf.mxu2  ;;  %v1131_v35 = vpop.f32.mrf.mxu3 }
 0x18a   :  { %v926_v36 = vadd.f32 %v1851_v54, %v925_v34 }
 0x18b   :  { %v765_v37 = vmax.f32 %v403_v32, 0.0  ;;  %v766_v38 = vmax.f32 %v609_v33, 0.0  ;;  %1391 = vmatmul.msk.f32.gmra.mxu0 %vm94_vm1, %v68_v31  ;;  %1455 = vmatmul.msk.f32.gmra.mxu1 %vm94_vm1, %v68_v31 }
 0x18c   :  { %v1132_v39 = vadd.f32 %v1131_v35, %v926_v36 }
 0x18d   :  { %975 = vmatmul.f32.gmra.mxu2 %v765_v37  ;;  %1181 = vmatmul.f32.gmra.mxu3 %v766_v38  ;;  %v74_v38 = vld [vmem:[%s2350_s0 + $0x1b0] sm:$0xff] }
 0x18e   :  { %1290 = vst [vmem:[%s2354_s5 + $0x78] sm:$0xff] %v1132_v39 }
 0x190   :  { %v405_v40 = vpop.f32.mrf.mxu0  ;;  %v611_v41 = vpop.f32.mrf.mxu1 }
 0x191   :  { %v406_v43 = vadd.f32 %v405_v40, %v1725_v55  ;;  %v612_v44 = vadd.f32 %v611_v41, %v1727_v56  ;;  %v928_v45 = vpop.f32.mrf.mxu2  ;;  %v1134_v46 = vpop.f32.mrf.mxu3 }
 0x192   :  { %v929_v47 = vadd.f32 %v1851_v54, %v928_v45 }
 0x193   :  { %v767_v48 = vmax.f32 %v406_v43, 0.0  ;;  %v768_v49 = vmax.f32 %v612_v44, 0.0  ;;  %1392 = vmatmul.msk.f32.gmra.mxu0 %vm94_vm1, %v69_v42  ;;  %1456 = vmatmul.msk.f32.gmra.mxu1 %vm94_vm1, %v69_v42 }
 0x194   :  { %v1135_v50 = vadd.f32 %v1134_v46, %v929_v47 }
 0x195   :  { %978 = vmatmul.f32.gmra.mxu2 %v767_v48  ;;  %1184 = vmatmul.f32.gmra.mxu3 %v768_v49  ;;  %v75_v49 = vld [vmem:[%s2350_s0 + $0x1b8] sm:$0xff] }
 0x196   :  { %1291 = vst [vmem:[%s2354_s5 + $0x80] sm:$0xff] %v1135_v50 }
 0x198   :  { %v408_v53 = vpop.f32.mrf.mxu0  ;;  %v614_v57 = vpop.f32.mrf.mxu1 }
 0x199   :  { %v409_v59 = vadd.f32 %v408_v53, %v1725_v55  ;;  %v615_v60 = vadd.f32 %v614_v57, %v1727_v56  ;;  %v931_v61 = vpop.f32.mrf.mxu2  ;;  %v1137_v62 = vpop.f32.mrf.mxu3 }
 0x19a   :  { %v932_v63 = vadd.f32 %v1851_v54, %v931_v61 }
 0x19b   :  { %v769_v0 = vmax.f32 %v409_v59, 0.0  ;;  %v770_v1 = vmax.f32 %v615_v60, 0.0  ;;  %1393 = vmatmul.msk.f32.gmra.mxu0 %vm94_vm1, %v70_v58  ;;  %1457 = vmatmul.msk.f32.gmra.mxu1 %vm94_vm1, %v70_v58 }
 0x19c   :  { %v1138_v2 = vadd.f32 %v1137_v62, %v932_v63 }
 0x19d   :  { %981 = vmatmul.f32.gmra.mxu2 %v769_v0  ;;  %1187 = vmatmul.f32.gmra.mxu3 %v770_v1  ;;  %v76_v1 = vld [vmem:[%s2350_s0 + $0x1c0] sm:$0xff] }
 0x19e   :  { %1292 = vst [vmem:[%s2354_s5 + $0x88] sm:$0xff] %v1138_v2 }
 0x1a0   :  { %v411_v3 = vpop.f32.mrf.mxu0  ;;  %v617_v4 = vpop.f32.mrf.mxu1 }
 0x1a1   :  { %v412_v6 = vadd.f32 %v411_v3, %v1725_v55  ;;  %v618_v7 = vadd.f32 %v617_v4, %v1727_v56  ;;  %v934_v8 = vpop.f32.mrf.mxu2  ;;  %v1140_v9 = vpop.f32.mrf.mxu3 }
 0x1a2   :  { %v935_v10 = vadd.f32 %v1851_v54, %v934_v8 }
 0x1a3   :  { %v771_v11 = vmax.f32 %v412_v6, 0.0  ;;  %v772_v12 = vmax.f32 %v618_v7, 0.0  ;;  %1394 = vmatmul.msk.f32.gmra.mxu0 %vm94_vm1, %v71_v5  ;;  %1458 = vmatmul.msk.f32.gmra.mxu1 %vm94_vm1, %v71_v5 }
 0x1a4   :  { %v1141_v13 = vadd.f32 %v1140_v9, %v935_v10 }
 0x1a5   :  { %984 = vmatmul.f32.gmra.mxu2 %v771_v11  ;;  %1190 = vmatmul.f32.gmra.mxu3 %v772_v12  ;;  %v77_v12 = vld [vmem:[%s2350_s0 + $0x1c8] sm:$0xff] }
 0x1a6   :  { %1293 = vst [vmem:[%s2354_s5 + $0x90] sm:$0xff] %v1141_v13 }
 0x1a8   :  { %v414_v14 = vpop.f32.mrf.mxu0  ;;  %v620_v15 = vpop.f32.mrf.mxu1 }
 0x1a9   :  { %v415_v17 = vadd.f32 %v414_v14, %v1725_v55  ;;  %v621_v18 = vadd.f32 %v620_v15, %v1727_v56  ;;  %v937_v19 = vpop.f32.mrf.mxu2  ;;  %v1143_v20 = vpop.f32.mrf.mxu3 }
 0x1aa   :  { %v938_v21 = vadd.f32 %v1851_v54, %v937_v19 }
 0x1ab   :  { %v773_v22 = vmax.f32 %v415_v17, 0.0  ;;  %v774_v23 = vmax.f32 %v621_v18, 0.0  ;;  %1395 = vmatmul.msk.f32.gmra.mxu0 %vm94_vm1, %v72_v16  ;;  %1459 = vmatmul.msk.f32.gmra.mxu1 %vm94_vm1, %v72_v16 }
 0x1ac   :  { %v1144_v24 = vadd.f32 %v1143_v20, %v938_v21 }
 0x1ad   :  { %987 = vmatmul.f32.gmra.mxu2 %v773_v22  ;;  %1193 = vmatmul.f32.gmra.mxu3 %v774_v23  ;;  %v78_v23 = vld [vmem:[%s2350_s0 + $0x1d0] sm:$0xff] }
 0x1ae   :  { %1294 = vst [vmem:[%s2354_s5 + $0x98] sm:$0xff] %v1144_v24 }
 0x1b0   :  { %v417_v25 = vpop.f32.mrf.mxu0  ;;  %v623_v26 = vpop.f32.mrf.mxu1 }
 0x1b1   :  { %v418_v28 = vadd.f32 %v417_v25, %v1725_v55  ;;  %v624_v29 = vadd.f32 %v623_v26, %v1727_v56  ;;  %v940_v30 = vpop.f32.mrf.mxu2  ;;  %v1146_v31 = vpop.f32.mrf.mxu3 }
 0x1b2   :  { %v941_v32 = vadd.f32 %v1851_v54, %v940_v30 }
 0x1b3   :  { %v775_v33 = vmax.f32 %v418_v28, 0.0  ;;  %v776_v34 = vmax.f32 %v624_v29, 0.0  ;;  %1396 = vmatmul.msk.f32.gmra.mxu0 %vm94_vm1, %v73_v27  ;;  %1460 = vmatmul.msk.f32.gmra.mxu1 %vm94_vm1, %v73_v27 }
 0x1b4   :  { %v1147_v35 = vadd.f32 %v1146_v31, %v941_v32 }
 0x1b5   :  { %990 = vmatmul.f32.gmra.mxu2 %v775_v33  ;;  %1196 = vmatmul.f32.gmra.mxu3 %v776_v34  ;;  %v79_v34 = vld [vmem:[%s2350_s0 + $0x1d8] sm:$0xff] }
 0x1b6   :  { %1295 = vst [vmem:[%s2354_s5 + $0xa0] sm:$0xff] %v1147_v35 }
 0x1b8   :  { %v420_v36 = vpop.f32.mrf.mxu0  ;;  %v626_v37 = vpop.f32.mrf.mxu1 }
 0x1b9   :  { %v421_v39 = vadd.f32 %v420_v36, %v1725_v55  ;;  %v627_v40 = vadd.f32 %v626_v37, %v1727_v56  ;;  %v943_v41 = vpop.f32.mrf.mxu2  ;;  %v1149_v42 = vpop.f32.mrf.mxu3 }
 0x1ba   :  { %v944_v43 = vadd.f32 %v1851_v54, %v943_v41 }
 0x1bb   :  { %v777_v44 = vmax.f32 %v421_v39, 0.0  ;;  %v778_v45 = vmax.f32 %v627_v40, 0.0  ;;  %1397 = vmatmul.msk.f32.gmra.mxu0 %vm94_vm1, %v74_v38  ;;  %1461 = vmatmul.msk.f32.gmra.mxu1 %vm94_vm1, %v74_v38 }
 0x1bc   :  { %v1150_v46 = vadd.f32 %v1149_v42, %v944_v43 }
 0x1bd   :  { %993 = vmatmul.f32.gmra.mxu2 %v777_v44  ;;  %1199 = vmatmul.f32.gmra.mxu3 %v778_v45  ;;  %v80_v45 = vld [vmem:[%s2350_s0 + $0x1e0] sm:$0xff] }
 0x1be   :  { %1296 = vst [vmem:[%s2354_s5 + $0xa8] sm:$0xff] %v1150_v46 }
 0x1c0   :  { %v423_v47 = vpop.f32.mrf.mxu0  ;;  %v629_v48 = vpop.f32.mrf.mxu1 }
 0x1c1   :  { %v424_v50 = vadd.f32 %v423_v47, %v1725_v55  ;;  %v630_v53 = vadd.f32 %v629_v48, %v1727_v56  ;;  %v946_v57 = vpop.f32.mrf.mxu2  ;;  %v1152_v58 = vpop.f32.mrf.mxu3 }
 0x1c2   :  { %v947_v59 = vadd.f32 %v1851_v54, %v946_v57 }
 0x1c3   :  { %v779_v60 = vmax.f32 %v424_v50, 0.0  ;;  %v780_v61 = vmax.f32 %v630_v53, 0.0  ;;  %1398 = vmatmul.msk.f32.gmra.mxu0 %vm94_vm1, %v75_v49  ;;  %1462 = vmatmul.msk.f32.gmra.mxu1 %vm94_vm1, %v75_v49 }
 0x1c4   :  { %v1153_v62 = vadd.f32 %v1152_v58, %v947_v59 }
 0x1c5   :  { %996 = vmatmul.f32.gmra.mxu2 %v779_v60  ;;  %1202 = vmatmul.f32.gmra.mxu3 %v780_v61  ;;  %v81_v61 = vld [vmem:[%s2350_s0 + $0x1e8] sm:$0xff] }
 0x1c6   :  { %1297 = vst [vmem:[%s2354_s5 + $0xb0] sm:$0xff] %v1153_v62 }
 0x1c8   :  { %v426_v63 = vpop.f32.mrf.mxu0  ;;  %v632_v0 = vpop.f32.mrf.mxu1 }
 0x1c9   :  { %v427_v2 = vadd.f32 %v426_v63, %v1725_v55  ;;  %v633_v3 = vadd.f32 %v632_v0, %v1727_v56  ;;  %v949_v4 = vpop.f32.mrf.mxu2  ;;  %v1155_v5 = vpop.f32.mrf.mxu3 }
 0x1ca   :  { %v950_v6 = vadd.f32 %v1851_v54, %v949_v4 }
 0x1cb   :  { %v781_v7 = vmax.f32 %v427_v2, 0.0  ;;  %v782_v8 = vmax.f32 %v633_v3, 0.0  ;;  %1399 = vmatmul.msk.f32.gmra.mxu0 %vm94_vm1, %v76_v1  ;;  %1463 = vmatmul.msk.f32.gmra.mxu1 %vm94_vm1, %v76_v1 }
 0x1cc   :  { %v1156_v9 = vadd.f32 %v1155_v5, %v950_v6 }
 0x1cd   :  { %999 = vmatmul.f32.gmra.mxu2 %v781_v7  ;;  %1205 = vmatmul.f32.gmra.mxu3 %v782_v8  ;;  %v82_v8 = vld [vmem:[%s2350_s0 + $0x1f0] sm:$0xff] }
 0x1ce   :  { %1298 = vst [vmem:[%s2354_s5 + $0xb8] sm:$0xff] %v1156_v9 }
 0x1d0   :  { %v429_v10 = vpop.f32.mrf.mxu0  ;;  %v635_v11 = vpop.f32.mrf.mxu1 }
 0x1d1   :  { %v430_v13 = vadd.f32 %v429_v10, %v1725_v55  ;;  %v636_v14 = vadd.f32 %v635_v11, %v1727_v56  ;;  %v952_v15 = vpop.f32.mrf.mxu2  ;;  %v1158_v16 = vpop.f32.mrf.mxu3 }
 0x1d2   :  { %v953_v17 = vadd.f32 %v1851_v54, %v952_v15 }
 0x1d3   :  { %v783_v18 = vmax.f32 %v430_v13, 0.0  ;;  %v784_v19 = vmax.f32 %v636_v14, 0.0  ;;  %1400 = vmatmul.msk.f32.gmra.mxu0 %vm94_vm1, %v77_v12  ;;  %1464 = vmatmul.msk.f32.gmra.mxu1 %vm94_vm1, %v77_v12 }
 0x1d4   :  { %v1159_v20 = vadd.f32 %v1158_v16, %v953_v17  ;;  %v307_v17 = vadd.f32 %v1713_v51, %v1725_v55 }
 0x1d5   :  { %1002 = vmatmul.f32.gmra.mxu2 %v783_v18  ;;  %1208 = vmatmul.f32.gmra.mxu3 %v784_v19  ;;  %v513_v18 = vadd.f32 %v1715_v52, %v1727_v56 }
 0x1d6   :  { %1299 = vst [vmem:[%s2354_s5 + $0xc0] sm:$0xff] %v1159_v20 }
 0x1d8   :  { %v432_v21 = vpop.f32.mrf.mxu0  ;;  %v638_v22 = vpop.f32.mrf.mxu1 }
 0x1d9   :  { %v433_v24 = vadd.f32 %v432_v21, %v1725_v55  ;;  %v639_v25 = vadd.f32 %v638_v22, %v1727_v56  ;;  %v955_v26 = vpop.f32.mrf.mxu2  ;;  %v1161_v27 = vpop.f32.mrf.mxu3  ;;  %v701_v21 = vmax.f32 %v307_v17, 0.0  ;;  %v702_v22 = vmax.f32 %v513_v18, 0.0 }
 0x1da   :  { %v956_v28 = vadd.f32 %v1851_v54, %v955_v26 }
 0x1db   :  { %v785_v29 = vmax.f32 %v433_v24, 0.0  ;;  %v786_v30 = vmax.f32 %v639_v25, 0.0  ;;  %1401 = vmatmul.msk.f32.gmra.mxu0 %vm94_vm1, %v78_v23  ;;  %1465 = vmatmul.msk.f32.gmra.mxu1 %vm94_vm1, %v78_v23 }
 0x1dc   :  { %v1162_v31 = vadd.f32 %v1161_v27, %v956_v28 }
 0x1dd   :  { %1005 = vmatmul.f32.gmra.mxu2 %v785_v29  ;;  %1211 = vmatmul.f32.gmra.mxu3 %v786_v30 }
 0x1de   :  { %1300 = vst [vmem:[%s2354_s5 + $0xc8] sm:$0xff] %v1162_v31 }
 0x1e0   :  { %v435_v32 = vpop.f32.mrf.mxu0  ;;  %v641_v33 = vpop.f32.mrf.mxu1 }
 0x1e1   :  { %v436_v35 = vadd.f32 %v435_v32, %v1725_v55  ;;  %v642_v36 = vadd.f32 %v641_v33, %v1727_v56  ;;  %v958_v37 = vpop.f32.mrf.mxu2  ;;  %v1164_v38 = vpop.f32.mrf.mxu3 }
 0x1e2   :  { %v959_v39 = vadd.f32 %v1851_v54, %v958_v37 }
 0x1e3   :  { %v787_v40 = vmax.f32 %v436_v35, 0.0  ;;  %v788_v41 = vmax.f32 %v642_v36, 0.0  ;;  %1402 = vmatmul.msk.f32.gmra.mxu0 %vm94_vm1, %v79_v34  ;;  %1466 = vmatmul.msk.f32.gmra.mxu1 %vm94_vm1, %v79_v34 }
 0x1e4   :  { %v1165_v42 = vadd.f32 %v1164_v38, %v959_v39 }
 0x1e5   :  { %1008 = vmatmul.f32.gmra.mxu2 %v787_v40  ;;  %1214 = vmatmul.f32.gmra.mxu3 %v788_v41 }
 0x1e6   :  { %1301 = vst [vmem:[%s2354_s5 + $0xd0] sm:$0xff] %v1165_v42 }
 0x1e8   :  { %v438_v43 = vpop.f32.mrf.mxu0  ;;  %v644_v44 = vpop.f32.mrf.mxu1 }
 0x1e9   :  { %v439_v46 = vadd.f32 %v438_v43, %v1725_v55  ;;  %v645_v47 = vadd.f32 %v644_v44, %v1727_v56  ;;  %v961_v48 = vpop.f32.mrf.mxu2  ;;  %v1167_v49 = vpop.f32.mrf.mxu3 }
 0x1ea   :  { %v962_v50 = vadd.f32 %v1851_v54, %v961_v48 }
 0x1eb   :  { %v789_v53 = vmax.f32 %v439_v46, 0.0  ;;  %v790_v57 = vmax.f32 %v645_v47, 0.0  ;;  %1403 = vmatmul.msk.f32.gmra.mxu0 %vm94_vm1, %v80_v45  ;;  %1467 = vmatmul.msk.f32.gmra.mxu1 %vm94_vm1, %v80_v45 }
 0x1ec   :  { %v1168_v58 = vadd.f32 %v1167_v49, %v962_v50 }
 0x1ed   :  { %1011 = vmatmul.f32.gmra.mxu2 %v789_v53  ;;  %1217 = vmatmul.f32.gmra.mxu3 %v790_v57 }
 0x1ee   :  { %1302 = vst [vmem:[%s2354_s5 + $0xd8] sm:$0xff] %v1168_v58 }
 0x1f0   :  { %v441_v59 = vpop.f32.mrf.mxu0  ;;  %v647_v60 = vpop.f32.mrf.mxu1 }
 0x1f1   :  { %v442_v62 = vadd.f32 %v441_v59, %v1725_v55  ;;  %v648_v63 = vadd.f32 %v647_v60, %v1727_v56  ;;  %v964_v0 = vpop.f32.mrf.mxu2  ;;  %v1170_v1 = vpop.f32.mrf.mxu3 }
 0x1f2   :  { %v965_v2 = vadd.f32 %v1851_v54, %v964_v0 }
 0x1f3   :  { %v791_v3 = vmax.f32 %v442_v62, 0.0  ;;  %v792_v4 = vmax.f32 %v648_v63, 0.0  ;;  %1404 = vmatmul.msk.f32.gmra.mxu0 %vm94_vm1, %v81_v61  ;;  %1468 = vmatmul.msk.f32.gmra.mxu1 %vm94_vm1, %v81_v61 }
 0x1f4   :  { %v1171_v5 = vadd.f32 %v1170_v1, %v965_v2 }
 0x1f5   :  { %1014 = vmatmul.f32.gmra.mxu2 %v791_v3  ;;  %1220 = vmatmul.f32.gmra.mxu3 %v792_v4 }
 0x1f6   :  { %1303 = vst [vmem:[%s2354_s5 + $0xe0] sm:$0xff] %v1171_v5 }
 0x1f8   :  { %v444_v6 = vpop.f32.mrf.mxu0  ;;  %v650_v7 = vpop.f32.mrf.mxu1 }
 0x1f9   :  { %v445_v9 = vadd.f32 %v444_v6, %v1725_v55  ;;  %v651_v10 = vadd.f32 %v650_v7, %v1727_v56  ;;  %v967_v11 = vpop.f32.mrf.mxu2  ;;  %v1173_v12 = vpop.f32.mrf.mxu3 }
 0x1fa   :  { %v968_v13 = vadd.f32 %v1851_v54, %v967_v11 }
 0x1fb   :  { %v793_v14 = vmax.f32 %v445_v9, 0.0  ;;  %v794_v15 = vmax.f32 %v651_v10, 0.0  ;;  %1405 = vmatmul.msk.f32.gmra.mxu0 %vm94_vm1, %v82_v8  ;;  %1469 = vmatmul.msk.f32.gmra.mxu1 %vm94_vm1, %v82_v8 }
 0x1fc   :  { %v1174_v16 = vadd.f32 %v1173_v12, %v968_v13 }
 0x1fd   :  { %1017 = vmatmul.f32.gmra.mxu2 %v793_v14  ;;  %1223 = vmatmul.f32.gmra.mxu3 %v794_v15 }
 0x1fe   :  { %1304 = vst [vmem:[%s2354_s5 + $0xe8] sm:$0xff] %v1174_v16 }
 0x200   :  { %v447_v19 = vpop.f32.mrf.mxu0  ;;  %v653_v20 = vpop.f32.mrf.mxu1 }
 0x201   :  { %v448_v23 = vadd.f32 %v447_v19, %v1725_v55  ;;  %v654_v24 = vadd.f32 %v653_v20, %v1727_v56  ;;  %v970_v25 = vpop.f32.mrf.mxu2  ;;  %v1176_v26 = vpop.f32.mrf.mxu3 }
 0x202   :  { %v971_v51 = vadd.f32 %v1851_v54, %v970_v25 }
 0x203   :  { %v795_v27 = vmax.f32 %v448_v23, 0.0  ;;  %v796_v52 = vmax.f32 %v654_v24, 0.0  ;;  %879 = vmatmul.f32.vlgmr.msrb.gmra.mxu0 %v701_v21  ;;  %1085 = vmatmul.f32.vlgmr.msrb.gmra.mxu1 %v702_v22 }
 0x204   :  { %v1177_v28 = vadd.f32 %v1176_v26, %v971_v51 }
 0x205   :  { %1020 = vmatmul.f32.gmra.mxu2 %v795_v27  ;;  %1226 = vmatmul.f32.gmra.mxu3 %v796_v52 }
 0x206   :  { %1305 = vst [vmem:[%s2354_s5 + $0xf0] sm:$0xff] %v1177_v28 }
 0x208   :  { %v450_v29 = vpop.f32.mrf.mxu0  ;;  %v656_v30 = vpop.f32.mrf.mxu1 }
 0x209   :  { %v451_v31 = vadd.f32 %v450_v29, %v1725_v55  ;;  %v657_v32 = vadd.f32 %v656_v30, %v1727_v56  ;;  %v973_v33 = vpop.f32.mrf.mxu2  ;;  %v1179_v34 = vpop.f32.mrf.mxu3 }
 0x20a   :  { %v974_v35 = vadd.f32 %v1851_v54, %v973_v33 }
 0x20b   :  { %v797_v36 = vmax.f32 %v451_v31, 0.0  ;;  %v798_v37 = vmax.f32 %v657_v32, 0.0 }
 0x20c   :  { %v1180_v38 = vadd.f32 %v1179_v34, %v974_v35 }
 0x20d   :  { %1023 = vmatmul.f32.gmra.mxu2 %v797_v36  ;;  %1229 = vmatmul.f32.gmra.mxu3 %v798_v37 }
 0x20e   :  { %1306 = vst [vmem:[%s2354_s5 + $0xf8] sm:$0xff] %v1180_v38 }
 0x210   :  { %v453_v39 = vpop.f32.mrf.mxu0  ;;  %v659_v40 = vpop.f32.mrf.mxu1 }
 0x211   :  { %v454_v41 = vadd.f32 %v453_v39, %v1725_v55  ;;  %v660_v42 = vadd.f32 %v659_v40, %v1727_v56  ;;  %v976_v43 = vpop.f32.mrf.mxu2  ;;  %v1182_v44 = vpop.f32.mrf.mxu3 }
 0x212   :  { %v977_v45 = vadd.f32 %v1851_v54, %v976_v43  ;;  %v2199_v54 = vld [vmem:[%s2353_s4] ss:$0 sm:$0xff] }
 0x213   :  { %v799_v46 = vmax.f32 %v454_v41, 0.0  ;;  %v800_v47 = vmax.f32 %v660_v42, 0.0 }
 0x214   :  { %v1183_v48 = vadd.f32 %v1182_v44, %v977_v45 }
 0x215   :  { %1026 = vmatmul.f32.gmra.mxu2 %v799_v46  ;;  %1232 = vmatmul.f32.gmra.mxu3 %v800_v47 }
 0x216   :  { %1307 = vst [vmem:[%s2354_s5 + $0x100] sm:$0xff] %v1183_v48 }
 0x218   :  { %v456_v49 = vpop.f32.mrf.mxu0  ;;  %v662_v50 = vpop.f32.mrf.mxu1 }
 0x219   :  { %v457_v53 = vadd.f32 %v456_v49, %v1725_v55  ;;  %v663_v57 = vadd.f32 %v662_v50, %v1727_v56  ;;  %v979_v58 = vpop.f32.mrf.mxu2  ;;  %v1185_v59 = vpop.f32.mrf.mxu3 }
 0x21a   :  { %v980_v60 = vadd.f32 %v2199_v54, %v979_v58 }
 0x21b   :  { %v801_v61 = vmax.f32 %v457_v53, 0.0  ;;  %v802_v62 = vmax.f32 %v663_v57, 0.0 }
 0x21c   :  { %v1186_v63 = vadd.f32 %v1185_v59, %v980_v60 }
 0x21d   :  { %1029 = vmatmul.f32.gmra.mxu2 %v801_v61  ;;  %1235 = vmatmul.f32.gmra.mxu3 %v802_v62 }
 0x21e   :  { %1308 = vst [vmem:[%s2354_s5 + $0x108] sm:$0xff] %v1186_v63 }
 0x220   :  { %v459_v0 = vpop.f32.mrf.mxu0  ;;  %v665_v1 = vpop.f32.mrf.mxu1 }
 0x221   :  { %v460_v2 = vadd.f32 %v459_v0, %v1725_v55  ;;  %v666_v3 = vadd.f32 %v665_v1, %v1727_v56  ;;  %v982_v4 = vpop.f32.mrf.mxu2  ;;  %v1188_v5 = vpop.f32.mrf.mxu3 }
 0x222   :  { %v983_v6 = vadd.f32 %v2199_v54, %v982_v4 }
 0x223   :  { %v803_v7 = vmax.f32 %v460_v2, 0.0  ;;  %v804_v8 = vmax.f32 %v666_v3, 0.0 }
 0x224   :  { %v1189_v9 = vadd.f32 %v1188_v5, %v983_v6 }
 0x225   :  { %1032 = vmatmul.f32.gmra.mxu2 %v803_v7  ;;  %1238 = vmatmul.f32.gmra.mxu3 %v804_v8 }
 0x226   :  { %1309 = vst [vmem:[%s2354_s5 + $0x110] sm:$0xff] %v1189_v9 }
 0x228   :  { %v462_v10 = vpop.f32.mrf.mxu0  ;;  %v668_v11 = vpop.f32.mrf.mxu1 }
 0x229   :  { %v463_v12 = vadd.f32 %v462_v10, %v1725_v55  ;;  %v669_v13 = vadd.f32 %v668_v11, %v1727_v56  ;;  %v985_v14 = vpop.f32.mrf.mxu2  ;;  %v1191_v15 = vpop.f32.mrf.mxu3 }
 0x22a   :  { %v986_v16 = vadd.f32 %v2199_v54, %v985_v14 }
 0x22b   :  { %v805_v17 = vmax.f32 %v463_v12, 0.0  ;;  %v806_v18 = vmax.f32 %v669_v13, 0.0 }
 0x22c   :  { %v1192_v19 = vadd.f32 %v1191_v15, %v986_v16 }
 0x22d   :  { %1035 = vmatmul.f32.gmra.mxu2 %v805_v17  ;;  %1241 = vmatmul.f32.gmra.mxu3 %v806_v18 }
 0x22e   :  { %1310 = vst [vmem:[%s2354_s5 + $0x118] sm:$0xff] %v1192_v19 }
 0x230   :  { %v465_v20 = vpop.f32.mrf.mxu0  ;;  %v671_v21 = vpop.f32.mrf.mxu1 }
 0x231   :  { %v466_v22 = vadd.f32 %v465_v20, %v1725_v55  ;;  %v672_v23 = vadd.f32 %v671_v21, %v1727_v56  ;;  %v988_v24 = vpop.f32.mrf.mxu2  ;;  %v1194_v25 = vpop.f32.mrf.mxu3 }
 0x232   :  { %v989_v26 = vadd.f32 %v2199_v54, %v988_v24 }
 0x233   :  { %v807_v51 = vmax.f32 %v466_v22, 0.0  ;;  %v808_v27 = vmax.f32 %v672_v23, 0.0 }
 0x234   :  { %v1195_v52 = vadd.f32 %v1194_v25, %v989_v26 }
 0x235   :  { %1038 = vmatmul.f32.gmra.mxu2 %v807_v51  ;;  %1244 = vmatmul.f32.gmra.mxu3 %v808_v27 }
 0x236   :  { %1311 = vst [vmem:[%s2354_s5 + $0x120] sm:$0xff] %v1195_v52 }
 0x238   :  { %v468_v28 = vpop.f32.mrf.mxu0  ;;  %v674_v29 = vpop.f32.mrf.mxu1 }
 0x239   :  { %v469_v30 = vadd.f32 %v468_v28, %v1725_v55  ;;  %v675_v31 = vadd.f32 %v674_v29, %v1727_v56  ;;  %v991_v32 = vpop.f32.mrf.mxu2  ;;  %v1197_v33 = vpop.f32.mrf.mxu3 }
 0x23a   :  { %v992_v34 = vadd.f32 %v2199_v54, %v991_v32 }
 0x23b   :  { %v809_v35 = vmax.f32 %v469_v30, 0.0  ;;  %v810_v36 = vmax.f32 %v675_v31, 0.0 }
 0x23c   :  { %v1198_v37 = vadd.f32 %v1197_v33, %v992_v34 }
 0x23d   :  { %1041 = vmatmul.f32.gmra.mxu2 %v809_v35  ;;  %1247 = vmatmul.f32.gmra.mxu3 %v810_v36 }
 0x23e   :  { %1312 = vst [vmem:[%s2354_s5 + $0x128] sm:$0xff] %v1198_v37 }
 0x240   :  { %v471_v38 = vpop.f32.mrf.mxu0  ;;  %v677_v39 = vpop.f32.mrf.mxu1 }
 0x241   :  { %v472_v40 = vadd.f32 %v471_v38, %v1725_v55  ;;  %v678_v41 = vadd.f32 %v677_v39, %v1727_v56  ;;  %v994_v42 = vpop.f32.mrf.mxu2  ;;  %v1200_v43 = vpop.f32.mrf.mxu3 }
 0x242   :  { %v995_v44 = vadd.f32 %v2199_v54, %v994_v42 }
 0x243   :  { %v811_v45 = vmax.f32 %v472_v40, 0.0  ;;  %v812_v46 = vmax.f32 %v678_v41, 0.0 }
 0x244   :  { %v1201_v47 = vadd.f32 %v1200_v43, %v995_v44 }
 0x245   :  { %1044 = vmatmul.f32.gmra.mxu2 %v811_v45  ;;  %1250 = vmatmul.f32.gmra.mxu3 %v812_v46 }
 0x246   :  { %1313 = vst [vmem:[%s2354_s5 + $0x130] sm:$0xff] %v1201_v47 }
 0x248   :  { %v474_v48 = vpop.f32.mrf.mxu0  ;;  %v680_v49 = vpop.f32.mrf.mxu1 }
 0x249   :  { %v475_v50 = vadd.f32 %v474_v48, %v1725_v55  ;;  %v681_v53 = vadd.f32 %v680_v49, %v1727_v56  ;;  %v997_v57 = vpop.f32.mrf.mxu2  ;;  %v1203_v58 = vpop.f32.mrf.mxu3 }
 0x24a   :  { %v998_v59 = vadd.f32 %v2199_v54, %v997_v57 }
 0x24b   :  { %v813_v60 = vmax.f32 %v475_v50, 0.0  ;;  %v814_v61 = vmax.f32 %v681_v53, 0.0 }
 0x24c   :  { %v1204_v62 = vadd.f32 %v1203_v58, %v998_v59 }
 0x24d   :  { %1047 = vmatmul.f32.gmra.mxu2 %v813_v60  ;;  %1253 = vmatmul.f32.gmra.mxu3 %v814_v61 }
 0x24e   :  { %1314 = vst [vmem:[%s2354_s5 + $0x138] sm:$0xff] %v1204_v62 }
 0x250   :  { %v477_v63 = vpop.f32.mrf.mxu0  ;;  %v683_v0 = vpop.f32.mrf.mxu1 }
 0x251   :  { %v478_v1 = vadd.f32 %v477_v63, %v1725_v55  ;;  %v684_v2 = vadd.f32 %v683_v0, %v1727_v56  ;;  %v1000_v3 = vpop.f32.mrf.mxu2  ;;  %v1206_v4 = vpop.f32.mrf.mxu3 }
 0x252   :  { %v1001_v5 = vadd.f32 %v2199_v54, %v1000_v3 }
 0x253   :  { %v815_v6 = vmax.f32 %v478_v1, 0.0  ;;  %v816_v7 = vmax.f32 %v684_v2, 0.0 }
 0x254   :  { %v1207_v8 = vadd.f32 %v1206_v4, %v1001_v5 }
 0x255   :  { %1050 = vmatmul.f32.gmra.mxu2 %v815_v6  ;;  %1256 = vmatmul.f32.gmra.mxu3 %v816_v7 }
 0x256   :  { %1315 = vst [vmem:[%s2354_s5 + $0x140] sm:$0xff] %v1207_v8 }
 0x258   :  { %v480_v9 = vpop.f32.mrf.mxu0  ;;  %v686_v10 = vpop.f32.mrf.mxu1 }
 0x259   :  { %v481_v11 = vadd.f32 %v480_v9, %v1725_v55  ;;  %v687_v12 = vadd.f32 %v686_v10, %v1727_v56  ;;  %v1003_v13 = vpop.f32.mrf.mxu2  ;;  %v1209_v14 = vpop.f32.mrf.mxu3 }
 0x25a   :  { %v1004_v15 = vadd.f32 %v2199_v54, %v1003_v13 }
 0x25b   :  { %v817_v16 = vmax.f32 %v481_v11, 0.0  ;;  %v818_v17 = vmax.f32 %v687_v12, 0.0 }
 0x25c   :  { %v1210_v18 = vadd.f32 %v1209_v14, %v1004_v15 }
 0x25d   :  { %1053 = vmatmul.f32.gmra.mxu2 %v817_v16  ;;  %1259 = vmatmul.f32.gmra.mxu3 %v818_v17 }
 0x25e   :  { %1316 = vst [vmem:[%s2354_s5 + $0x148] sm:$0xff] %v1210_v18 }
 0x260   :  { %v483_v19 = vpop.f32.mrf.mxu0  ;;  %v689_v20 = vpop.f32.mrf.mxu1 }
 0x261   :  { %v484_v21 = vadd.f32 %v483_v19, %v1725_v55  ;;  %v690_v22 = vadd.f32 %v689_v20, %v1727_v56  ;;  %v1006_v23 = vpop.f32.mrf.mxu2  ;;  %v1212_v24 = vpop.f32.mrf.mxu3 }
 0x262   :  { %v1007_v25 = vadd.f32 %v2199_v54, %v1006_v23 }
 0x263   :  { %v819_v26 = vmax.f32 %v484_v21, 0.0  ;;  %v820_v51 = vmax.f32 %v690_v22, 0.0 }
 0x264   :  { %v1213_v27 = vadd.f32 %v1212_v24, %v1007_v25 }
 0x265   :  { %1056 = vmatmul.f32.gmra.mxu2 %v819_v26  ;;  %1262 = vmatmul.f32.gmra.mxu3 %v820_v51 }
 0x266   :  { %1317 = vst [vmem:[%s2354_s5 + $0x150] sm:$0xff] %v1213_v27 }
 0x268   :  { %v486_v52 = vpop.f32.mrf.mxu0  ;;  %v692_v28 = vpop.f32.mrf.mxu1 }
 0x269   :  { %v487_v29 = vadd.f32 %v486_v52, %v1725_v55  ;;  %v693_v30 = vadd.f32 %v692_v28, %v1727_v56  ;;  %v1009_v31 = vpop.f32.mrf.mxu2  ;;  %v1215_v32 = vpop.f32.mrf.mxu3 }
 0x26a   :  { %v1010_v33 = vadd.f32 %v2199_v54, %v1009_v31 }
 0x26b   :  { %v821_v34 = vmax.f32 %v487_v29, 0.0  ;;  %v822_v35 = vmax.f32 %v693_v30, 0.0 }
 0x26c   :  { %v1216_v36 = vadd.f32 %v1215_v32, %v1010_v33 }
 0x26d   :  { %1059 = vmatmul.f32.gmra.mxu2 %v821_v34  ;;  %1265 = vmatmul.f32.gmra.mxu3 %v822_v35 }
 0x26e   :  { %1318 = vst [vmem:[%s2354_s5 + $0x158] sm:$0xff] %v1216_v36 }
 0x270   :  { %v489_v37 = vpop.f32.mrf.mxu0  ;;  %v695_v38 = vpop.f32.mrf.mxu1 }
 0x271   :  { %v490_v39 = vadd.f32 %v489_v37, %v1725_v55  ;;  %v696_v40 = vadd.f32 %v695_v38, %v1727_v56  ;;  %v1012_v41 = vpop.f32.mrf.mxu2  ;;  %v1218_v42 = vpop.f32.mrf.mxu3 }
 0x272   :  { %v1013_v43 = vadd.f32 %v2199_v54, %v1012_v41 }
 0x273   :  { %v823_v44 = vmax.f32 %v490_v39, 0.0  ;;  %v824_v45 = vmax.f32 %v696_v40, 0.0 }
 0x274   :  { %v1219_v46 = vadd.f32 %v1218_v42, %v1013_v43 }
 0x275   :  { %1062 = vmatmul.f32.gmra.mxu2 %v823_v44  ;;  %1268 = vmatmul.f32.gmra.mxu3 %v824_v45 }
 0x276   :  { %1319 = vst [vmem:[%s2354_s5 + $0x160] sm:$0xff] %v1219_v46 }
 0x278   :  { %v492_v47 = vpop.f32.mrf.mxu0  ;;  %v698_v48 = vpop.f32.mrf.mxu1 }
 0x279   :  { %v493_v49 = vadd.f32 %v492_v47, %v1725_v55  ;;  %v699_v50 = vadd.f32 %v698_v48, %v1727_v56  ;;  %v1015_v53 = vpop.f32.mrf.mxu2  ;;  %v1221_v57 = vpop.f32.mrf.mxu3 }
 0x27a   :  { %v1016_v58 = vadd.f32 %v2199_v54, %v1015_v53 }
 0x27b   :  { %v825_v59 = vmax.f32 %v493_v49, 0.0  ;;  %v826_v60 = vmax.f32 %v699_v50, 0.0 }
 0x27c   :  { %v1222_v61 = vadd.f32 %v1221_v57, %v1016_v58 }
 0x27d   :  { %1065 = vmatmul.f32.gmra.mxu2 %v825_v59  ;;  %1271 = vmatmul.f32.gmra.mxu3 %v826_v60 }
 0x27e   :  { %1320 = vst [vmem:[%s2354_s5 + $0x168] sm:$0xff] %v1222_v61 }
 0x280   :  { %v880_v62 = vpop.f32.mrf.mxu0  ;;  %v1086_v1 = vpop.f32.mrf.mxu1 }
 0x281   :  { %v881_v63 = vadd.f32 %v2199_v54, %v880_v62  ;;  %v1018_v0 = vpop.f32.mrf.mxu2  ;;  %v1224_v55 = vpop.f32.mrf.mxu3 }
 0x282   :  { %v1019_v56 = vadd.f32 %v2199_v54, %v1018_v0 }
 0x283   :  { %v1087_v2 = vadd.f32 %v1086_v1, %v881_v63 }
 0x284   :  { %v1225_v3 = vadd.f32 %v1224_v55, %v1019_v56 }
 0x285   :  { %1275 = vst [vmem:[%s2354_s5] sm:$0xff] %v1087_v2 }
 0x286   :  { %1321 = vst [vmem:[%s2354_s5 + $0x170] sm:$0xff] %v1225_v3 }
 0x289   :  { %v1021_v4 = vpop.f32.mrf.mxu2  ;;  %v1227_v5 = vpop.f32.mrf.mxu3 }
 0x28a   :  { %v1022_v6 = vadd.f32 %v2199_v54, %v1021_v4 }
 0x28c   :  { %v1228_v7 = vadd.f32 %v1227_v5, %v1022_v6 }
 0x28e   :  { %1322 = vst [vmem:[%s2354_s5 + $0x178] sm:$0xff] %v1228_v7 }
 0x291   :  { %v1024_v8 = vpop.f32.mrf.mxu2  ;;  %v1230_v9 = vpop.f32.mrf.mxu3 }
 0x292   :  { %v1025_v10 = vadd.f32 %v2199_v54, %v1024_v8 }
 0x294   :  { %v1231_v11 = vadd.f32 %v1230_v9, %v1025_v10 }
 0x296   :  { %1323 = vst [vmem:[%s2354_s5 + $0x180] sm:$0xff] %v1231_v11 }
 0x299   :  { %v1027_v12 = vpop.f32.mrf.mxu2  ;;  %v1233_v13 = vpop.f32.mrf.mxu3 }
 0x29a   :  { %v1028_v14 = vadd.f32 %v2199_v54, %v1027_v12 }
 0x29c   :  { %v1234_v15 = vadd.f32 %v1233_v13, %v1028_v14 }
 0x29e   :  { %1324 = vst [vmem:[%s2354_s5 + $0x188] sm:$0xff] %v1234_v15 }
 0x2a1   :  { %v1030_v16 = vpop.f32.mrf.mxu2  ;;  %v1236_v17 = vpop.f32.mrf.mxu3 }
 0x2a2   :  { %v1031_v18 = vadd.f32 %v2199_v54, %v1030_v16 }
 0x2a4   :  { %v1237_v19 = vadd.f32 %v1236_v17, %v1031_v18 }
 0x2a6   :  { %1325 = vst [vmem:[%s2354_s5 + $0x190] sm:$0xff] %v1237_v19 }
 0x2a9   :  { %v1033_v20 = vpop.f32.mrf.mxu2  ;;  %v1239_v21 = vpop.f32.mrf.mxu3 }
 0x2aa   :  { %v1034_v22 = vadd.f32 %v2199_v54, %v1033_v20 }
 0x2ac   :  { %v1240_v23 = vadd.f32 %v1239_v21, %v1034_v22 }
 0x2ae   :  { %1326 = vst [vmem:[%s2354_s5 + $0x198] sm:$0xff] %v1240_v23 }
 0x2b1   :  { %v1036_v24 = vpop.f32.mrf.mxu2  ;;  %v1242_v25 = vpop.f32.mrf.mxu3 }
 0x2b2   :  { %v1037_v26 = vadd.f32 %v2199_v54, %v1036_v24 }
 0x2b4   :  { %v1243_v51 = vadd.f32 %v1242_v25, %v1037_v26 }
 0x2b6   :  { %1327 = vst [vmem:[%s2354_s5 + $0x1a0] sm:$0xff] %v1243_v51 }
 0x2b9   :  { %v1039_v27 = vpop.f32.mrf.mxu2  ;;  %v1245_v52 = vpop.f32.mrf.mxu3 }
 0x2ba   :  { %v1040_v28 = vadd.f32 %v2199_v54, %v1039_v27 }
 0x2bc   :  { %v1246_v29 = vadd.f32 %v1245_v52, %v1040_v28 }
 0x2be   :  { %1328 = vst [vmem:[%s2354_s5 + $0x1a8] sm:$0xff] %v1246_v29 }
 0x2c1   :  { %v1042_v30 = vpop.f32.mrf.mxu2  ;;  %v1248_v31 = vpop.f32.mrf.mxu3 }
 0x2c2   :  { %v1043_v32 = vadd.f32 %v2199_v54, %v1042_v30 }
 0x2c4   :  { %v1249_v33 = vadd.f32 %v1248_v31, %v1043_v32 }
 0x2c6   :  { %1329 = vst [vmem:[%s2354_s5 + $0x1b0] sm:$0xff] %v1249_v33 }
 0x2c9   :  { %v1045_v34 = vpop.f32.mrf.mxu2  ;;  %v1251_v35 = vpop.f32.mrf.mxu3 }
 0x2ca   :  { %v1046_v36 = vadd.f32 %v2199_v54, %v1045_v34 }
 0x2cc   :  { %v1252_v37 = vadd.f32 %v1251_v35, %v1046_v36 }
 0x2ce   :  { %1330 = vst [vmem:[%s2354_s5 + $0x1b8] sm:$0xff] %v1252_v37 }
 0x2d1   :  { %v1048_v38 = vpop.f32.mrf.mxu2  ;;  %v1254_v39 = vpop.f32.mrf.mxu3 }
 0x2d2   :  { %v1049_v40 = vadd.f32 %v2199_v54, %v1048_v38 }
 0x2d4   :  { %v1255_v41 = vadd.f32 %v1254_v39, %v1049_v40 }
 0x2d6   :  { %1331 = vst [vmem:[%s2354_s5 + $0x1c0] sm:$0xff] %v1255_v41 }
 0x2d9   :  { %v1051_v42 = vpop.f32.mrf.mxu2  ;;  %v1257_v43 = vpop.f32.mrf.mxu3 }
 0x2da   :  { %v1052_v44 = vadd.f32 %v2199_v54, %v1051_v42 }
 0x2dc   :  { %v1258_v45 = vadd.f32 %v1257_v43, %v1052_v44 }
 0x2de   :  { %1332 = vst [vmem:[%s2354_s5 + $0x1c8] sm:$0xff] %v1258_v45 }
 0x2e1   :  { %v1054_v46 = vpop.f32.mrf.mxu2  ;;  %v1260_v47 = vpop.f32.mrf.mxu3 }
 0x2e2   :  { %v1055_v48 = vadd.f32 %v2199_v54, %v1054_v46 }
 0x2e4   :  { %v1261_v49 = vadd.f32 %v1260_v47, %v1055_v48 }
 0x2e6   :  { %1333 = vst [vmem:[%s2354_s5 + $0x1d0] sm:$0xff] %v1261_v49 }
 0x2e9   :  { %v1057_v50 = vpop.f32.mrf.mxu2  ;;  %v1263_v53 = vpop.f32.mrf.mxu3 }
 0x2ea   :  { %v1058_v57 = vadd.f32 %v2199_v54, %v1057_v50 }
 0x2ec   :  { %v1264_v58 = vadd.f32 %v1263_v53, %v1058_v57 }
 0x2ee   :  { %1334 = vst [vmem:[%s2354_s5 + $0x1d8] sm:$0xff] %v1264_v58 }
 0x2f1   :  { %v1060_v59 = vpop.f32.mrf.mxu2  ;;  %v1266_v60 = vpop.f32.mrf.mxu3 }
 0x2f2   :  { %v1061_v61 = vadd.f32 %v2199_v54, %v1060_v59 }
 0x2f4   :  { %v1267_v62 = vadd.f32 %v1266_v60, %v1061_v61 }
 0x2f6   :  { %1335 = vst [vmem:[%s2354_s5 + $0x1e0] sm:$0xff] %v1267_v62 }
 0x2f9   :  { %v1063_v63 = vpop.f32.mrf.mxu2  ;;  %v1269_v0 = vpop.f32.mrf.mxu3 }
 0x2fa   :  { %v1064_v55 = vadd.f32 %v2199_v54, %v1063_v63 }
 0x2fc   :  { %v1270_v56 = vadd.f32 %v1269_v0, %v1064_v55 }
 0x2fe   :  { %1336 = vst [vmem:[%s2354_s5 + $0x1e8] sm:$0xff] %v1270_v56 }
 0x301   :  { %v1066_v1 = vpop.f32.mrf.mxu2  ;;  %v1272_v2 = vpop.f32.mrf.mxu3 }
 0x302   :  { %v1067_v3 = vadd.f32 %v2199_v54, %v1066_v1 }
 0x304   :  { %v1273_v4 = vadd.f32 %v1272_v2, %v1067_v3 }
 0x306   :  { %1337 = vst [vmem:[%s2354_s5 + $0x1f0] sm:$0xff] %v1273_v4 }

</bundles_post_ra>
